<compile_context>
chip_gen: v6e
topology: v6e:2x2x1
jax: 0.10.0
libtpu: 0.0.40
codegen_flags: <defaults>
</compile_context>

<pallas_src>
import numpy as np
import jax
import jax.numpy as jnp
from jax.experimental import pallas as pl
from jax.experimental.pallas import tpu as pltpu

# ----------------------------- hyperparameters ------------------------------
EMBED_DIM = 16     # embedding_dim
HIDDEN    = 32     # hidden_dim
VOCAB     = 20     # vocab_size
TAGSET    = 5      # tagset_size
MAX_LEN   = 8      # max_len == sequence length
FEAT_DIM  = 30     # hidden2tagfeat output size (hard-coded in the module)

LANE_W    = 128    # lane width of the packed weight slab and the output slab
FEAT_OFF  = 32     # lane offset of tag_spacefeat inside the output slab
assert 4 * HIDDEN == LANE_W


def _round_up(x, m):
    return (x + m - 1) // m * m


# ------------------- packed weight-slab row layout (x 128 lanes) ------------
VP    = _round_up(VOCAB, 8)        # 24: vocab rows padded to sublane multiple
R_EMB = 0                          # [0:24)    emb @ W_ih^T + (b_ih+b_hh), reordered
R_WHH = R_EMB + VP                 # [24:56)   W_hh^T (H, 4H)
R_WF  = R_WHH + HIDDEN             # [56:88)   hidden2tagfeat^T padded (H, 128)
R_BF  = R_WF + HIDDEN              # [88]      hidden2tagfeat bias padded (128,)
R_WPK = _round_up(R_BF + 1, 8)     # [96:224)  lane-dense output packer (128,128)
R_BPK = R_WPK + LANE_W             # [224]     output packer bias (128,)
PR    = _round_up(R_BPK + 1, 8)    # 232 total rows


# --------------------------------- kernel -----------------------------------
def lstm_tagger_kernel(sent_ref,    # VMEM (TB, S) int32  token ids
                       w2b2_ref,    # SMEM (1, S+1) f32   hidden2tag2 [w | b]
                       par_ref,     # VMEM (PR, 128) f32  packed resident weights
                       out_ref):    # VMEM (TB, 128) f32  lanes 0:5 tag2, 32:62 feat
    TB, S = sent_ref.shape
    H = HIDDEN

    # static row-slices of the resident weight slab (constant block index)
    emb_proj = par_ref[R_EMB:R_EMB + VP, :]       # (VP, 4H) lookup+proj+bias table
    w_hh_t   = par_ref[R_WHH:R_WHH + H, :]        # (H, 4H)
    wf_t     = par_ref[R_WF:R_WF + H, :]          # (H, 128) lanes 0:30 valid
    bf_p     = par_ref[R_BF:R_BF + 1, :]          # (1, 128)
    w_pack   = par_ref[R_WPK:R_WPK + LANE_W, :]   # (128, 128) feat -> [tag2|feat]
    b_pack   = par_ref[R_BPK:R_BPK + 1, :]        # (1, 128)

    ids = sent_ref[...]                                           # (TB, S) int32
    viota = jax.lax.broadcasted_iota(jnp.int32, (TB, VP), 1)      # (TB, VP)

    h = jnp.zeros((TB, H), jnp.float32)
    c = jnp.zeros((TB, H), jnp.float32)
    tag_acc = jnp.zeros((TB, H), jnp.float32)

    for t in range(S):                            # S static -> fully unrolled
        # embedding lookup fused with the LSTM input projection + bias:
        # one-hot (TB,VP) @ (VP,4H) MXU matmul (out-of-vocab ids -> zeros).
        oh_t = (ids[:, t:t + 1] == viota).astype(jnp.float32)           # (TB, VP)
        xw_t = jnp.dot(oh_t, emb_proj, preferred_element_type=jnp.float32)
        gates = xw_t + jnp.dot(h, w_hh_t, preferred_element_type=jnp.float32)
        # gates reordered host-side to [i, f, o, g]:
        sig = jax.nn.sigmoid(gates[:, 0:3 * H])                          # i|f|o
        g_g = jnp.tanh(gates[:, 3 * H:4 * H])                            # g
        i_g = sig[:, 0:H]
        f_g = sig[:, H:2 * H]
        o_g = sig[:, 2 * H:3 * H]
        c = f_g * c + i_g * g_g
        h = o_g * jnp.tanh(c)
        # fused hidden2tag2 time reduction: SMEM scalar x (TB,H) accumulate
        tag_acc = tag_acc + w2b2_ref[0, t] * h

    tag_in = tag_acc + w2b2_ref[0, S]                                # + b2, (TB, H)
    # hidden2tagfeat: (TB,H)@(H,128); lanes 0:30 = feat, lanes 30:128 = 0
    feat_p = jnp.dot(tag_in, wf_t, preferred_element_type=jnp.float32) + bf_p
    # lane-dense pack: lanes 0:5 = feat @ wt^T + bt, lanes 32:62 = feat
    out_ref[...] = jnp.dot(feat_p, w_pack,
                           preferred_element_type=jnp.float32) + b_pack


# -------------------------------- wrappers -----------------------------------
def _pack_params(params):
    (emb, w_ih, w_hh, b_ih, b_hh, wf, bf, wt, bt, w2, b2) = params
    H = HIDDEN

    def reorder(x):   # PyTorch gate order [i, f, g, o] -> [i, f, o, g] (axis 0)
        return jnp.concatenate([x[:2 * H], x[3 * H:4 * H], x[2 * H:3 * H]], axis=0)

    w_ih_r = reorder(w_ih)                                   # (4H, E)
    w_hh_r = reorder(w_hh)                                   # (4H, H)
    b_r = reorder(b_ih + b_hh)                               # (4H,)

    # fold Embedding -> (x @ W_ih^T + b) into one table for the one-hot matmul
    emb_proj = emb.astype(jnp.float32) @ w_ih_r.T + b_r[None, :]   # (V, 4H)
    emb_proj = jnp.pad(emb_proj, ((0, VP - VOCAB), (0, 0)))        # (VP, 4H)

    w_hh_t = w_hh_r.T                                              # (H, 4H)
    wf_t_p = jnp.pad(wf.T, ((0, 0), (0, LANE_W - FEAT_DIM)))       # (H, 128)
    bf_p = jnp.pad(bf, (0, LANE_W - FEAT_DIM))                     # (128,)

    # lane-dense output packer: slab_out = feat_p @ w_pack + b_pack
    #   lanes 0:TAGSET              = feat @ wt^T + bt   (tag_space2)
    #   lanes FEAT_OFF:FEAT_OFF+30  = feat               (tag_spacefeat)
    w_pack = jnp.zeros((LANE_W, LANE_W), jnp.float32)
    w_pack = w_pack.at[0:FEAT_DIM, 0:TAGSET].set(wt.T)
    w_pack = w_pack.at[jnp.arange(FEAT_DIM),
                       FEAT_OFF + jnp.arange(FEAT_DIM)].set(1.0)
    b_pack = jnp.zeros((LANE_W,), jnp.float32).at[0:TAGSET].set(bt)

    slab = jnp.zeros((PR, LANE_W), jnp.float32)
    slab = slab.at[R_EMB:R_EMB + VP].set(emb_proj)
    slab = slab.at[R_WHH:R_WHH + H].set(w_hh_t)
    slab = slab.at[R_WF:R_WF + H].set(wf_t_p)
    slab = slab.at[R_BF].set(bf_p)
    slab = slab.at[R_WPK:R_WPK + LANE_W].set(w_pack)
    slab = slab.at[R_BPK].set(b_pack)

    w2b2 = jnp.concatenate([w2.reshape(-1), b2.reshape(-1)]
                           ).astype(jnp.float32).reshape(1, MAX_LEN + 1)
    return slab, w2b2


def lstm_tagger_forward_batched(sentences, params, tb=256):
    """sentences: (B, S) int32 — runs the module's forward once per row.

    tb = sentences per grid block.  Prefer >=2 blocks on v7x (2 TensorCores);
    TB up to a few hundred is only KBs of VMEM, well under any scoped limit.
    """
    B, S = sentences.shape
    assert S == MAX_LEN, "sequence length must equal max_len"
    slab, w2b2 = _pack_params(params)

    TB = _round_up(max(8, min(int(tb), B)), 8)
    Bp = _round_up(B, TB)
    sent = sentences.astype(jnp.int32)
    if Bp != B:
        sent = jnp.concatenate([sent, jnp.zeros((Bp - B, S), jnp.int32)], axis=0)

    out = pl.pallas_call(
        lstm_tagger_kernel,
        out_shape=jax.ShapeDtypeStruct((Bp, LANE_W), jnp.float32),
        grid=(Bp // TB,),
        in_specs=[
            pl.BlockSpec((TB, S), lambda i: (i, 0)),              # token ids
            pl.BlockSpec(memory_space=pltpu.MemorySpace.SMEM),    # [w2 | b2]
            pl.BlockSpec((PR, LANE_W), lambda i: (0, 0)),         # resident weights
        ],
        out_specs=pl.BlockSpec((TB, LANE_W), lambda i: (i, 0)),
        compiler_params=pltpu.CompilerParams(
            dimension_semantics=("parallel",)),
    )(sent, w2b2, slab)

    tag2 = out[:B, 0:TAGSET]
    feat = out[:B, FEAT_OFF:FEAT_OFF + FEAT_DIM]
    return tag2, feat


def lstm_tagger_forward(sentence, params):
    """Single-sentence forward, matching the PyTorch module's signature."""
    tag2, feat = lstm_tagger_forward_batched(sentence[None, :], params, tb=8)
    return tag2[0], feat[0]


# --------------------------- pure-JAX reference ------------------------------
def lstm_tagger_reference(sentence, params):
    (emb, w_ih, w_hh, b_ih, b_hh, wf, bf, wt, bt, w2, b2) = params
    H = HIDDEN
    embeds = emb[sentence]                              # (S, E)

    def step(carry, x_t):
        h, c = carry
        gates = x_t @ w_ih.T + b_ih + h @ w_hh.T + b_hh
        i_g = jax.nn.sigmoid(gates[0 * H:1 * H])
        f_g = jax.nn.sigmoid(gates[1 * H:2 * H])
        g_g = jnp.tanh(gates[2 * H:3 * H])
        o_g = jax.nn.sigmoid(gates[3 * H:4 * H])
        c_new = f_g * c + i_g * g_g
        h_new = o_g * jnp.tanh(c_new)
        return (h_new, c_new), h_new

    h0 = jnp.zeros((H,), jnp.float32)
    c0 = jnp.zeros((H,), jnp.float32)
    _, lstm_out = jax.lax.scan(step, (h0, c0), embeds)  # (S, H)

    tag_space = lstm_out.T @ w2[0] + b2[0]              # (H,)
    feat = tag_space @ wf.T + bf                        # (30,)
    tag2 = feat @ wt.T + bt                             # (T,)
    return tag2, feat


# ---------------------------------- main -------------------------------------
if __name__ == "__main__":
    key = jax.random.PRNGKey(0)
    ks = jax.random.split(key, 13)

    def u(k, shape, fan_in):
        bound = 1.0 / np.sqrt(fan_in)
        return jax.random.uniform(k, shape, jnp.float32, -bound, bound)

    # deterministic parameter init (shapes match the PyTorch module's __init__)
    emb  = jax.random.normal(ks[0], (VOCAB, EMBED_DIM), jnp.float32)   # Embedding
    w_ih = u(ks[1], (4 * HIDDEN, EMBED_DIM), HIDDEN)                   # LSTM
    w_hh = u(ks[2], (4 * HIDDEN, HIDDEN), HIDDEN)
    b_ih = u(ks[3], (4 * HIDDEN,), HIDDEN)
    b_hh = u(ks[4], (4 * HIDDEN,), HIDDEN)
    wf   = u(ks[5], (FEAT_DIM, HIDDEN), HIDDEN)                        # hidden2tagfeat
    bf   = u(ks[6], (FEAT_DIM,), HIDDEN)
    wt   = u(ks[7], (TAGSET, FEAT_DIM), FEAT_DIM)                      # hidden2tag
    bt   = u(ks[8], (TAGSET,), FEAT_DIM)
    w2   = u(ks[9], (1, MAX_LEN), MAX_LEN)                             # hidden2tag2
    b2   = u(ks[10], (1,), MAX_LEN)

    params = (emb, w_ih, w_hh, b_ih, b_hh, wf, bf, wt, bt, w2, b2)

    # ---- single-sentence path (matches the PyTorch module exactly) ----------
    sentence = jax.random.randint(ks[11], (MAX_LEN,), 0, VOCAB, dtype=jnp.int32)
    tag2, feat = lstm_tagger_forward(sentence, params)
    jax.block_until_ready((tag2, feat))

    tag2_ref, feat_ref = lstm_tagger_reference(sentence, params)
    np.testing.assert_allclose(np.asarray(tag2), np.asarray(tag2_ref),
                               rtol=1e-2, atol=1e-2)
    np.testing.assert_allclose(np.asarray(feat), np.asarray(feat_ref),
                               rtol=1e-2, atol=1e-2)

    # ---- batched path: multiple sentences per block, multiple parallel blocks
    B = 64
    sentences = jax.random.randint(ks[12], (B, MAX_LEN), 0, VOCAB, dtype=jnp.int32)
    tag2_b, feat_b = lstm_tagger_forward_batched(sentences, params, tb=16)
    jax.block_until_ready((tag2_b, feat_b))

    tag2_rb, feat_rb = jax.vmap(lambda s: lstm_tagger_reference(s, params))(sentences)
    np.testing.assert_allclose(np.asarray(tag2_b), np.asarray(tag2_rb),
                               rtol=1e-2, atol=1e-2)
    np.testing.assert_allclose(np.asarray(feat_b), np.asarray(feat_rb),
                               rtol=1e-2, atol=1e-2)

    print("KERNEL_OK")
</pallas_src>

<mosaic_0001>
module attributes {stable_mosaic.version = 11 : i64} {
  func.func @lstm_tagger_kernel(%arg0: i32, %arg1: memref<8x8xi32, #tpu.memory_space<vmem>>, %arg2: memref<1x9xf32, #tpu.memory_space<smem>>, %arg3: memref<232x128xf32, #tpu.memory_space<vmem>>, %arg4: memref<8x128xf32, #tpu.memory_space<vmem>>) attributes {dimension_semantics = [#tpu.dimension_semantics<parallel>], iteration_bounds = array<i64: 1>, scalar_prefetch = 0 : i64, scratch_operands = 0 : i64, tpu.core_type = #tpu.core_type<tc>, window_params = [{transform_indices = @transform_0, window_bounds = array<i64: 8, 8>}, {transform_indices = @transform_1, window_bounds = array<i64: 1, 9>}, {pipeline_mode = #tpu.pipeline_mode<synchronous>, transform_indices = @transform_2, window_bounds = array<i64: 232, 128>}, {transform_indices = @transform_3, window_bounds = array<i64: 8, 128>}]} {
    %c0 = arith.constant 0 : index
    %c0_0 = arith.constant 0 : index
    %0 = vector.load %arg3[%c0, %c0_0] : memref<232x128xf32, #tpu.memory_space<vmem>>, vector<24x128xf32>
    %c24 = arith.constant 24 : index
    %c0_1 = arith.constant 0 : index
    %1 = vector.load %arg3[%c24, %c0_1] : memref<232x128xf32, #tpu.memory_space<vmem>>, vector<32x128xf32>
    %c56 = arith.constant 56 : index
    %c0_2 = arith.constant 0 : index
    %2 = vector.load %arg3[%c56, %c0_2] : memref<232x128xf32, #tpu.memory_space<vmem>>, vector<32x128xf32>
    %c88 = arith.constant 88 : index
    %c0_3 = arith.constant 0 : index
    %3 = vector.load %arg3[%c88, %c0_3] : memref<232x128xf32, #tpu.memory_space<vmem>>, vector<1x128xf32>
    %c96 = arith.constant 96 : index
    %c0_4 = arith.constant 0 : index
    %4 = vector.load %arg3[%c96, %c0_4] : memref<232x128xf32, #tpu.memory_space<vmem>>, vector<128x128xf32>
    %c224 = arith.constant 224 : index
    %c0_5 = arith.constant 0 : index
    %5 = vector.load %arg3[%c224, %c0_5] : memref<232x128xf32, #tpu.memory_space<vmem>>, vector<1x128xf32>
    %c0_6 = arith.constant 0 : index
    %c0_7 = arith.constant 0 : index
    %6 = vector.load %arg1[%c0_6, %c0_7] : memref<8x8xi32, #tpu.memory_space<vmem>>, vector<8x8xi32>
    %7 = tpu.iota {dimensions = array<i32: 1>} : vector<8x24xi32>
    %cst = arith.constant 0.000000e+00 : f32
    %8 = vector.broadcast %cst : f32 to vector<8x32xf32>
    %cst_8 = arith.constant 0.000000e+00 : f32
    %9 = vector.broadcast %cst_8 : f32 to vector<8x32xf32>
    %cst_9 = arith.constant 0.000000e+00 : f32
    %10 = vector.broadcast %cst_9 : f32 to vector<8x32xf32>
    %11 = vector.extract_strided_slice %6 {offsets = [0, 0], sizes = [8, 1], strides = [1, 1]} : vector<8x8xi32> to vector<8x1xi32>
    %12 = vector.broadcast %11 : vector<8x1xi32> to vector<8x24xi32>
    %13 = arith.cmpi eq, %12, %7 : vector<8x24xi32>
    %14 = arith.extui %13 : vector<8x24xi1> to vector<8x24xi32>
    %15 = arith.sitofp %14 : vector<8x24xi32> to vector<8x24xf32>
    %cst_10 = arith.constant dense<0.000000e+00> : vector<8x128xf32>
    %16 = tpu.matmul %15, %0, %cst_10 {dimension_numbers = #tpu.dot_dimension_numbers<[1], [0], [0], [1], [0, 0, 1, 1], [], []>} : vector<8x24xf32>, vector<24x128xf32>, vector<8x128xf32> -> vector<8x128xf32>
    %cst_11 = arith.constant dense<0.000000e+00> : vector<8x128xf32>
    %17 = tpu.matmul %8, %1, %cst_11 {dimension_numbers = #tpu.dot_dimension_numbers<[1], [0], [0], [1], [0, 0, 1, 1], [], []>} : vector<8x32xf32>, vector<32x128xf32>, vector<8x128xf32> -> vector<8x128xf32>
    %18 = arith.addf %16, %17 : vector<8x128xf32>
    %19 = vector.extract_strided_slice %18 {offsets = [0, 0], sizes = [8, 96], strides = [1, 1]} : vector<8x128xf32> to vector<8x96xf32>
    %20 = arith.negf %19 : vector<8x96xf32>
    %21 = math.exp %20 : vector<8x96xf32>
    %cst_12 = arith.constant 1.000000e+00 : f32
    %22 = vector.broadcast %cst_12 : f32 to vector<8x96xf32>
    %23 = arith.addf %22, %21 : vector<8x96xf32>
    %24 = arith.divf %22, %23 : vector<8x96xf32>
    %25 = vector.extract_strided_slice %18 {offsets = [0, 96], sizes = [8, 32], strides = [1, 1]} : vector<8x128xf32> to vector<8x32xf32>
    %26 = math.tanh %25 : vector<8x32xf32>
    %27 = vector.extract_strided_slice %24 {offsets = [0, 0], sizes = [8, 32], strides = [1, 1]} : vector<8x96xf32> to vector<8x32xf32>
    %28 = vector.extract_strided_slice %24 {offsets = [0, 32], sizes = [8, 32], strides = [1, 1]} : vector<8x96xf32> to vector<8x32xf32>
    %29 = vector.extract_strided_slice %24 {offsets = [0, 64], sizes = [8, 32], strides = [1, 1]} : vector<8x96xf32> to vector<8x32xf32>
    %30 = arith.mulf %28, %9 : vector<8x32xf32>
    %31 = arith.mulf %27, %26 : vector<8x32xf32>
    %32 = arith.addf %30, %31 : vector<8x32xf32>
    %33 = math.tanh %32 : vector<8x32xf32>
    %34 = arith.mulf %29, %33 : vector<8x32xf32>
    %c0_13 = arith.constant 0 : index
    %c0_14 = arith.constant 0 : index
    %35 = memref.load %arg2[%c0_13, %c0_14] : memref<1x9xf32, #tpu.memory_space<smem>>
    %36 = vector.broadcast %35 : f32 to vector<8x32xf32>
    %37 = arith.mulf %36, %34 : vector<8x32xf32>
    %38 = arith.addf %10, %37 : vector<8x32xf32>
    %39 = vector.extract_strided_slice %6 {offsets = [0, 1], sizes = [8, 1], strides = [1, 1]} : vector<8x8xi32> to vector<8x1xi32>
    %40 = vector.broadcast %39 : vector<8x1xi32> to vector<8x24xi32>
    %41 = arith.cmpi eq, %40, %7 : vector<8x24xi32>
    %42 = arith.extui %41 : vector<8x24xi1> to vector<8x24xi32>
    %43 = arith.sitofp %42 : vector<8x24xi32> to vector<8x24xf32>
    %cst_15 = arith.constant dense<0.000000e+00> : vector<8x128xf32>
    %44 = tpu.matmul %43, %0, %cst_15 {dimension_numbers = #tpu.dot_dimension_numbers<[1], [0], [0], [1], [0, 0, 1, 1], [], []>} : vector<8x24xf32>, vector<24x128xf32>, vector<8x128xf32> -> vector<8x128xf32>
    %cst_16 = arith.constant dense<0.000000e+00> : vector<8x128xf32>
    %45 = tpu.matmul %34, %1, %cst_16 {dimension_numbers = #tpu.dot_dimension_numbers<[1], [0], [0], [1], [0, 0, 1, 1], [], []>} : vector<8x32xf32>, vector<32x128xf32>, vector<8x128xf32> -> vector<8x128xf32>
    %46 = arith.addf %44, %45 : vector<8x128xf32>
    %47 = vector.extract_strided_slice %46 {offsets = [0, 0], sizes = [8, 96], strides = [1, 1]} : vector<8x128xf32> to vector<8x96xf32>
    %48 = arith.negf %47 : vector<8x96xf32>
    %49 = math.exp %48 : vector<8x96xf32>
    %cst_17 = arith.constant 1.000000e+00 : f32
    %50 = vector.broadcast %cst_17 : f32 to vector<8x96xf32>
    %51 = arith.addf %50, %49 : vector<8x96xf32>
    %52 = arith.divf %50, %51 : vector<8x96xf32>
    %53 = vector.extract_strided_slice %46 {offsets = [0, 96], sizes = [8, 32], strides = [1, 1]} : vector<8x128xf32> to vector<8x32xf32>
    %54 = math.tanh %53 : vector<8x32xf32>
    %55 = vector.extract_strided_slice %52 {offsets = [0, 0], sizes = [8, 32], strides = [1, 1]} : vector<8x96xf32> to vector<8x32xf32>
    %56 = vector.extract_strided_slice %52 {offsets = [0, 32], sizes = [8, 32], strides = [1, 1]} : vector<8x96xf32> to vector<8x32xf32>
    %57 = vector.extract_strided_slice %52 {offsets = [0, 64], sizes = [8, 32], strides = [1, 1]} : vector<8x96xf32> to vector<8x32xf32>
    %58 = arith.mulf %56, %32 : vector<8x32xf32>
    %59 = arith.mulf %55, %54 : vector<8x32xf32>
    %60 = arith.addf %58, %59 : vector<8x32xf32>
    %61 = math.tanh %60 : vector<8x32xf32>
    %62 = arith.mulf %57, %61 : vector<8x32xf32>
    %c0_18 = arith.constant 0 : index
    %c1 = arith.constant 1 : index
    %63 = memref.load %arg2[%c0_18, %c1] : memref<1x9xf32, #tpu.memory_space<smem>>
    %64 = vector.broadcast %63 : f32 to vector<8x32xf32>
    %65 = arith.mulf %64, %62 : vector<8x32xf32>
    %66 = arith.addf %38, %65 : vector<8x32xf32>
    %67 = vector.extract_strided_slice %6 {offsets = [0, 2], sizes = [8, 1], strides = [1, 1]} : vector<8x8xi32> to vector<8x1xi32>
    %68 = vector.broadcast %67 : vector<8x1xi32> to vector<8x24xi32>
    %69 = arith.cmpi eq, %68, %7 : vector<8x24xi32>
    %70 = arith.extui %69 : vector<8x24xi1> to vector<8x24xi32>
    %71 = arith.sitofp %70 : vector<8x24xi32> to vector<8x24xf32>
    %cst_19 = arith.constant dense<0.000000e+00> : vector<8x128xf32>
    %72 = tpu.matmul %71, %0, %cst_19 {dimension_numbers = #tpu.dot_dimension_numbers<[1], [0], [0], [1], [0, 0, 1, 1], [], []>} : vector<8x24xf32>, vector<24x128xf32>, vector<8x128xf32> -> vector<8x128xf32>
    %cst_20 = arith.constant dense<0.000000e+00> : vector<8x128xf32>
    %73 = tpu.matmul %62, %1, %cst_20 {dimension_numbers = #tpu.dot_dimension_numbers<[1], [0], [0], [1], [0, 0, 1, 1], [], []>} : vector<8x32xf32>, vector<32x128xf32>, vector<8x128xf32> -> vector<8x128xf32>
    %74 = arith.addf %72, %73 : vector<8x128xf32>
    %75 = vector.extract_strided_slice %74 {offsets = [0, 0], sizes = [8, 96], strides = [1, 1]} : vector<8x128xf32> to vector<8x96xf32>
    %76 = arith.negf %75 : vector<8x96xf32>
    %77 = math.exp %76 : vector<8x96xf32>
    %cst_21 = arith.constant 1.000000e+00 : f32
    %78 = vector.broadcast %cst_21 : f32 to vector<8x96xf32>
    %79 = arith.addf %78, %77 : vector<8x96xf32>
    %80 = arith.divf %78, %79 : vector<8x96xf32>
    %81 = vector.extract_strided_slice %74 {offsets = [0, 96], sizes = [8, 32], strides = [1, 1]} : vector<8x128xf32> to vector<8x32xf32>
    %82 = math.tanh %81 : vector<8x32xf32>
    %83 = vector.extract_strided_slice %80 {offsets = [0, 0], sizes = [8, 32], strides = [1, 1]} : vector<8x96xf32> to vector<8x32xf32>
    %84 = vector.extract_strided_slice %80 {offsets = [0, 32], sizes = [8, 32], strides = [1, 1]} : vector<8x96xf32> to vector<8x32xf32>
    %85 = vector.extract_strided_slice %80 {offsets = [0, 64], sizes = [8, 32], strides = [1, 1]} : vector<8x96xf32> to vector<8x32xf32>
    %86 = arith.mulf %84, %60 : vector<8x32xf32>
    %87 = arith.mulf %83, %82 : vector<8x32xf32>
    %88 = arith.addf %86, %87 : vector<8x32xf32>
    %89 = math.tanh %88 : vector<8x32xf32>
    %90 = arith.mulf %85, %89 : vector<8x32xf32>
    %c0_22 = arith.constant 0 : index
    %c2 = arith.constant 2 : index
    %91 = memref.load %arg2[%c0_22, %c2] : memref<1x9xf32, #tpu.memory_space<smem>>
    %92 = vector.broadcast %91 : f32 to vector<8x32xf32>
    %93 = arith.mulf %92, %90 : vector<8x32xf32>
    %94 = arith.addf %66, %93 : vector<8x32xf32>
    %95 = vector.extract_strided_slice %6 {offsets = [0, 3], sizes = [8, 1], strides = [1, 1]} : vector<8x8xi32> to vector<8x1xi32>
    %96 = vector.broadcast %95 : vector<8x1xi32> to vector<8x24xi32>
    %97 = arith.cmpi eq, %96, %7 : vector<8x24xi32>
    %98 = arith.extui %97 : vector<8x24xi1> to vector<8x24xi32>
    %99 = arith.sitofp %98 : vector<8x24xi32> to vector<8x24xf32>
    %cst_23 = arith.constant dense<0.000000e+00> : vector<8x128xf32>
    %100 = tpu.matmul %99, %0, %cst_23 {dimension_numbers = #tpu.dot_dimension_numbers<[1], [0], [0], [1], [0, 0, 1, 1], [], []>} : vector<8x24xf32>, vector<24x128xf32>, vector<8x128xf32> -> vector<8x128xf32>
    %cst_24 = arith.constant dense<0.000000e+00> : vector<8x128xf32>
    %101 = tpu.matmul %90, %1, %cst_24 {dimension_numbers = #tpu.dot_dimension_numbers<[1], [0], [0], [1], [0, 0, 1, 1], [], []>} : vector<8x32xf32>, vector<32x128xf32>, vector<8x128xf32> -> vector<8x128xf32>
    %102 = arith.addf %100, %101 : vector<8x128xf32>
    %103 = vector.extract_strided_slice %102 {offsets = [0, 0], sizes = [8, 96], strides = [1, 1]} : vector<8x128xf32> to vector<8x96xf32>
    %104 = arith.negf %103 : vector<8x96xf32>
    %105 = math.exp %104 : vector<8x96xf32>
    %cst_25 = arith.constant 1.000000e+00 : f32
    %106 = vector.broadcast %cst_25 : f32 to vector<8x96xf32>
    %107 = arith.addf %106, %105 : vector<8x96xf32>
    %108 = arith.divf %106, %107 : vector<8x96xf32>
    %109 = vector.extract_strided_slice %102 {offsets = [0, 96], sizes = [8, 32], strides = [1, 1]} : vector<8x128xf32> to vector<8x32xf32>
    %110 = math.tanh %109 : vector<8x32xf32>
    %111 = vector.extract_strided_slice %108 {offsets = [0, 0], sizes = [8, 32], strides = [1, 1]} : vector<8x96xf32> to vector<8x32xf32>
    %112 = vector.extract_strided_slice %108 {offsets = [0, 32], sizes = [8, 32], strides = [1, 1]} : vector<8x96xf32> to vector<8x32xf32>
    %113 = vector.extract_strided_slice %108 {offsets = [0, 64], sizes = [8, 32], strides = [1, 1]} : vector<8x96xf32> to vector<8x32xf32>
    %114 = arith.mulf %112, %88 : vector<8x32xf32>
    %115 = arith.mulf %111, %110 : vector<8x32xf32>
    %116 = arith.addf %114, %115 : vector<8x32xf32>
    %117 = math.tanh %116 : vector<8x32xf32>
    %118 = arith.mulf %113, %117 : vector<8x32xf32>
    %c0_26 = arith.constant 0 : index
    %c3 = arith.constant 3 : index
    %119 = memref.load %arg2[%c0_26, %c3] : memref<1x9xf32, #tpu.memory_space<smem>>
    %120 = vector.broadcast %119 : f32 to vector<8x32xf32>
    %121 = arith.mulf %120, %118 : vector<8x32xf32>
    %122 = arith.addf %94, %121 : vector<8x32xf32>
    %123 = vector.extract_strided_slice %6 {offsets = [0, 4], sizes = [8, 1], strides = [1, 1]} : vector<8x8xi32> to vector<8x1xi32>
    %124 = vector.broadcast %123 : vector<8x1xi32> to vector<8x24xi32>
    %125 = arith.cmpi eq, %124, %7 : vector<8x24xi32>
    %126 = arith.extui %125 : vector<8x24xi1> to vector<8x24xi32>
    %127 = arith.sitofp %126 : vector<8x24xi32> to vector<8x24xf32>
    %cst_27 = arith.constant dense<0.000000e+00> : vector<8x128xf32>
    %128 = tpu.matmul %127, %0, %cst_27 {dimension_numbers = #tpu.dot_dimension_numbers<[1], [0], [0], [1], [0, 0, 1, 1], [], []>} : vector<8x24xf32>, vector<24x128xf32>, vector<8x128xf32> -> vector<8x128xf32>
    %cst_28 = arith.constant dense<0.000000e+00> : vector<8x128xf32>
    %129 = tpu.matmul %118, %1, %cst_28 {dimension_numbers = #tpu.dot_dimension_numbers<[1], [0], [0], [1], [0, 0, 1, 1], [], []>} : vector<8x32xf32>, vector<32x128xf32>, vector<8x128xf32> -> vector<8x128xf32>
    %130 = arith.addf %128, %129 : vector<8x128xf32>
    %131 = vector.extract_strided_slice %130 {offsets = [0, 0], sizes = [8, 96], strides = [1, 1]} : vector<8x128xf32> to vector<8x96xf32>
    %132 = arith.negf %131 : vector<8x96xf32>
    %133 = math.exp %132 : vector<8x96xf32>
    %cst_29 = arith.constant 1.000000e+00 : f32
    %134 = vector.broadcast %cst_29 : f32 to vector<8x96xf32>
    %135 = arith.addf %134, %133 : vector<8x96xf32>
    %136 = arith.divf %134, %135 : vector<8x96xf32>
    %137 = vector.extract_strided_slice %130 {offsets = [0, 96], sizes = [8, 32], strides = [1, 1]} : vector<8x128xf32> to vector<8x32xf32>
    %138 = math.tanh %137 : vector<8x32xf32>
    %139 = vector.extract_strided_slice %136 {offsets = [0, 0], sizes = [8, 32], strides = [1, 1]} : vector<8x96xf32> to vector<8x32xf32>
    %140 = vector.extract_strided_slice %136 {offsets = [0, 32], sizes = [8, 32], strides = [1, 1]} : vector<8x96xf32> to vector<8x32xf32>
    %141 = vector.extract_strided_slice %136 {offsets = [0, 64], sizes = [8, 32], strides = [1, 1]} : vector<8x96xf32> to vector<8x32xf32>
    %142 = arith.mulf %140, %116 : vector<8x32xf32>
    %143 = arith.mulf %139, %138 : vector<8x32xf32>
    %144 = arith.addf %142, %143 : vector<8x32xf32>
    %145 = math.tanh %144 : vector<8x32xf32>
    %146 = arith.mulf %141, %145 : vector<8x32xf32>
    %c0_30 = arith.constant 0 : index
    %c4 = arith.constant 4 : index
    %147 = memref.load %arg2[%c0_30, %c4] : memref<1x9xf32, #tpu.memory_space<smem>>
    %148 = vector.broadcast %147 : f32 to vector<8x32xf32>
    %149 = arith.mulf %148, %146 : vector<8x32xf32>
    %150 = arith.addf %122, %149 : vector<8x32xf32>
    %151 = vector.extract_strided_slice %6 {offsets = [0, 5], sizes = [8, 1], strides = [1, 1]} : vector<8x8xi32> to vector<8x1xi32>
    %152 = vector.broadcast %151 : vector<8x1xi32> to vector<8x24xi32>
    %153 = arith.cmpi eq, %152, %7 : vector<8x24xi32>
    %154 = arith.extui %153 : vector<8x24xi1> to vector<8x24xi32>
    %155 = arith.sitofp %154 : vector<8x24xi32> to vector<8x24xf32>
    %cst_31 = arith.constant dense<0.000000e+00> : vector<8x128xf32>
    %156 = tpu.matmul %155, %0, %cst_31 {dimension_numbers = #tpu.dot_dimension_numbers<[1], [0], [0], [1], [0, 0, 1, 1], [], []>} : vector<8x24xf32>, vector<24x128xf32>, vector<8x128xf32> -> vector<8x128xf32>
    %cst_32 = arith.constant dense<0.000000e+00> : vector<8x128xf32>
    %157 = tpu.matmul %146, %1, %cst_32 {dimension_numbers = #tpu.dot_dimension_numbers<[1], [0], [0], [1], [0, 0, 1, 1], [], []>} : vector<8x32xf32>, vector<32x128xf32>, vector<8x128xf32> -> vector<8x128xf32>
    %158 = arith.addf %156, %157 : vector<8x128xf32>
    %159 = vector.extract_strided_slice %158 {offsets = [0, 0], sizes = [8, 96], strides = [1, 1]} : vector<8x128xf32> to vector<8x96xf32>
    %160 = arith.negf %159 : vector<8x96xf32>
    %161 = math.exp %160 : vector<8x96xf32>
    %cst_33 = arith.constant 1.000000e+00 : f32
    %162 = vector.broadcast %cst_33 : f32 to vector<8x96xf32>
    %163 = arith.addf %162, %161 : vector<8x96xf32>
    %164 = arith.divf %162, %163 : vector<8x96xf32>
    %165 = vector.extract_strided_slice %158 {offsets = [0, 96], sizes = [8, 32], strides = [1, 1]} : vector<8x128xf32> to vector<8x32xf32>
    %166 = math.tanh %165 : vector<8x32xf32>
    %167 = vector.extract_strided_slice %164 {offsets = [0, 0], sizes = [8, 32], strides = [1, 1]} : vector<8x96xf32> to vector<8x32xf32>
    %168 = vector.extract_strided_slice %164 {offsets = [0, 32], sizes = [8, 32], strides = [1, 1]} : vector<8x96xf32> to vector<8x32xf32>
    %169 = vector.extract_strided_slice %164 {offsets = [0, 64], sizes = [8, 32], strides = [1, 1]} : vector<8x96xf32> to vector<8x32xf32>
    %170 = arith.mulf %168, %144 : vector<8x32xf32>
    %171 = arith.mulf %167, %166 : vector<8x32xf32>
    %172 = arith.addf %170, %171 : vector<8x32xf32>
    %173 = math.tanh %172 : vector<8x32xf32>
    %174 = arith.mulf %169, %173 : vector<8x32xf32>
    %c0_34 = arith.constant 0 : index
    %c5 = arith.constant 5 : index
    %175 = memref.load %arg2[%c0_34, %c5] : memref<1x9xf32, #tpu.memory_space<smem>>
    %176 = vector.broadcast %175 : f32 to vector<8x32xf32>
    %177 = arith.mulf %176, %174 : vector<8x32xf32>
    %178 = arith.addf %150, %177 : vector<8x32xf32>
    %179 = vector.extract_strided_slice %6 {offsets = [0, 6], sizes = [8, 1], strides = [1, 1]} : vector<8x8xi32> to vector<8x1xi32>
    %180 = vector.broadcast %179 : vector<8x1xi32> to vector<8x24xi32>
    %181 = arith.cmpi eq, %180, %7 : vector<8x24xi32>
    %182 = arith.extui %181 : vector<8x24xi1> to vector<8x24xi32>
    %183 = arith.sitofp %182 : vector<8x24xi32> to vector<8x24xf32>
    %cst_35 = arith.constant dense<0.000000e+00> : vector<8x128xf32>
    %184 = tpu.matmul %183, %0, %cst_35 {dimension_numbers = #tpu.dot_dimension_numbers<[1], [0], [0], [1], [0, 0, 1, 1], [], []>} : vector<8x24xf32>, vector<24x128xf32>, vector<8x128xf32> -> vector<8x128xf32>
    %cst_36 = arith.constant dense<0.000000e+00> : vector<8x128xf32>
    %185 = tpu.matmul %174, %1, %cst_36 {dimension_numbers = #tpu.dot_dimension_numbers<[1], [0], [0], [1], [0, 0, 1, 1], [], []>} : vector<8x32xf32>, vector<32x128xf32>, vector<8x128xf32> -> vector<8x128xf32>
    %186 = arith.addf %184, %185 : vector<8x128xf32>
    %187 = vector.extract_strided_slice %186 {offsets = [0, 0], sizes = [8, 96], strides = [1, 1]} : vector<8x128xf32> to vector<8x96xf32>
    %188 = arith.negf %187 : vector<8x96xf32>
    %189 = math.exp %188 : vector<8x96xf32>
    %cst_37 = arith.constant 1.000000e+00 : f32
    %190 = vector.broadcast %cst_37 : f32 to vector<8x96xf32>
    %191 = arith.addf %190, %189 : vector<8x96xf32>
    %192 = arith.divf %190, %191 : vector<8x96xf32>
    %193 = vector.extract_strided_slice %186 {offsets = [0, 96], sizes = [8, 32], strides = [1, 1]} : vector<8x128xf32> to vector<8x32xf32>
    %194 = math.tanh %193 : vector<8x32xf32>
    %195 = vector.extract_strided_slice %192 {offsets = [0, 0], sizes = [8, 32], strides = [1, 1]} : vector<8x96xf32> to vector<8x32xf32>
    %196 = vector.extract_strided_slice %192 {offsets = [0, 32], sizes = [8, 32], strides = [1, 1]} : vector<8x96xf32> to vector<8x32xf32>
    %197 = vector.extract_strided_slice %192 {offsets = [0, 64], sizes = [8, 32], strides = [1, 1]} : vector<8x96xf32> to vector<8x32xf32>
    %198 = arith.mulf %196, %172 : vector<8x32xf32>
    %199 = arith.mulf %195, %194 : vector<8x32xf32>
    %200 = arith.addf %198, %199 : vector<8x32xf32>
    %201 = math.tanh %200 : vector<8x32xf32>
    %202 = arith.mulf %197, %201 : vector<8x32xf32>
    %c0_38 = arith.constant 0 : index
    %c6 = arith.constant 6 : index
    %203 = memref.load %arg2[%c0_38, %c6] : memref<1x9xf32, #tpu.memory_space<smem>>
    %204 = vector.broadcast %203 : f32 to vector<8x32xf32>
    %205 = arith.mulf %204, %202 : vector<8x32xf32>
    %206 = arith.addf %178, %205 : vector<8x32xf32>
    %207 = vector.extract_strided_slice %6 {offsets = [0, 7], sizes = [8, 1], strides = [1, 1]} : vector<8x8xi32> to vector<8x1xi32>
    %208 = vector.broadcast %207 : vector<8x1xi32> to vector<8x24xi32>
    %209 = arith.cmpi eq, %208, %7 : vector<8x24xi32>
    %210 = arith.extui %209 : vector<8x24xi1> to vector<8x24xi32>
    %211 = arith.sitofp %210 : vector<8x24xi32> to vector<8x24xf32>
    %cst_39 = arith.constant dense<0.000000e+00> : vector<8x128xf32>
    %212 = tpu.matmul %211, %0, %cst_39 {dimension_numbers = #tpu.dot_dimension_numbers<[1], [0], [0], [1], [0, 0, 1, 1], [], []>} : vector<8x24xf32>, vector<24x128xf32>, vector<8x128xf32> -> vector<8x128xf32>
    %cst_40 = arith.constant dense<0.000000e+00> : vector<8x128xf32>
    %213 = tpu.matmul %202, %1, %cst_40 {dimension_numbers = #tpu.dot_dimension_numbers<[1], [0], [0], [1], [0, 0, 1, 1], [], []>} : vector<8x32xf32>, vector<32x128xf32>, vector<8x128xf32> -> vector<8x128xf32>
    %214 = arith.addf %212, %213 : vector<8x128xf32>
    %215 = vector.extract_strided_slice %214 {offsets = [0, 0], sizes = [8, 96], strides = [1, 1]} : vector<8x128xf32> to vector<8x96xf32>
    %216 = arith.negf %215 : vector<8x96xf32>
    %217 = math.exp %216 : vector<8x96xf32>
    %cst_41 = arith.constant 1.000000e+00 : f32
    %218 = vector.broadcast %cst_41 : f32 to vector<8x96xf32>
    %219 = arith.addf %218, %217 : vector<8x96xf32>
    %220 = arith.divf %218, %219 : vector<8x96xf32>
    %221 = vector.extract_strided_slice %214 {offsets = [0, 96], sizes = [8, 32], strides = [1, 1]} : vector<8x128xf32> to vector<8x32xf32>
    %222 = math.tanh %221 : vector<8x32xf32>
    %223 = vector.extract_strided_slice %220 {offsets = [0, 0], sizes = [8, 32], strides = [1, 1]} : vector<8x96xf32> to vector<8x32xf32>
    %224 = vector.extract_strided_slice %220 {offsets = [0, 32], sizes = [8, 32], strides = [1, 1]} : vector<8x96xf32> to vector<8x32xf32>
    %225 = vector.extract_strided_slice %220 {offsets = [0, 64], sizes = [8, 32], strides = [1, 1]} : vector<8x96xf32> to vector<8x32xf32>
    %226 = arith.mulf %224, %200 : vector<8x32xf32>
    %227 = arith.mulf %223, %222 : vector<8x32xf32>
    %228 = arith.addf %226, %227 : vector<8x32xf32>
    %229 = math.tanh %228 : vector<8x32xf32>
    %230 = arith.mulf %225, %229 : vector<8x32xf32>
    %c0_42 = arith.constant 0 : index
    %c7 = arith.constant 7 : index
    %231 = memref.load %arg2[%c0_42, %c7] : memref<1x9xf32, #tpu.memory_space<smem>>
    %232 = vector.broadcast %231 : f32 to vector<8x32xf32>
    %233 = arith.mulf %232, %230 : vector<8x32xf32>
    %234 = arith.addf %206, %233 : vector<8x32xf32>
    %c0_43 = arith.constant 0 : index
    %c8 = arith.constant 8 : index
    %235 = memref.load %arg2[%c0_43, %c8] : memref<1x9xf32, #tpu.memory_space<smem>>
    %236 = vector.broadcast %235 : f32 to vector<8x32xf32>
    %237 = arith.addf %234, %236 : vector<8x32xf32>
    %cst_44 = arith.constant dense<0.000000e+00> : vector<8x128xf32>
    %238 = tpu.matmul %237, %2, %cst_44 {dimension_numbers = #tpu.dot_dimension_numbers<[1], [0], [0], [1], [0, 0, 1, 1], [], []>} : vector<8x32xf32>, vector<32x128xf32>, vector<8x128xf32> -> vector<8x128xf32>
    %239 = vector.broadcast %3 : vector<1x128xf32> to vector<8x128xf32>
    %240 = arith.addf %238, %239 : vector<8x128xf32>
    %cst_45 = arith.constant dense<0.000000e+00> : vector<8x128xf32>
    %241 = tpu.matmul %240, %4, %cst_45 {dimension_numbers = #tpu.dot_dimension_numbers<[1], [0], [0], [1], [0, 0, 1, 1], [], []>} : vector<8x128xf32>, vector<128x128xf32>, vector<8x128xf32> -> vector<8x128xf32>
    %242 = vector.broadcast %5 : vector<1x128xf32> to vector<8x128xf32>
    %243 = arith.addf %241, %242 : vector<8x128xf32>
    %c0_46 = arith.constant 0 : index
    %c0_47 = arith.constant 0 : index
    %244 = vector.load %arg4[%c0_46, %c0_47] : memref<8x128xf32, #tpu.memory_space<vmem>>, vector<8x128xf32>
    tpu.vector_store %arg4[%c0_46, %c0_47], %243 {strides = array<i32>} : memref<8x128xf32, #tpu.memory_space<vmem>>, vector<8x128xf32>,
    return
  }
  func.func @transform_0(%arg0: i32) -> (i32, i32) {
    %c0_i32 = arith.constant 0 : i32
    %c0_i32_0 = arith.constant 0 : i32
    return %arg0, %c0_i32 : i32, i32
  }
  func.func @transform_1(%arg0: i32) -> (i32, i32) {
    %c0_i32 = arith.constant 0 : i32
    %c0_i32_0 = arith.constant 0 : i32
    %c0_i32_1 = arith.constant 0 : i32
    return %c0_i32, %c0_i32_0 : i32, i32
  }
  func.func @transform_2(%arg0: i32) -> (i32, i32) {
    %c0_i32 = arith.constant 0 : i32
    %c0_i32_0 = arith.constant 0 : i32
    %c0_i32_1 = arith.constant 0 : i32
    return %c0_i32, %c0_i32_0 : i32, i32
  }
  func.func @transform_3(%arg0: i32) -> (i32, i32) {
    %c0_i32 = arith.constant 0 : i32
    %c0_i32_0 = arith.constant 0 : i32
    return %arg0, %c0_i32 : i32, i32
  }
}

</mosaic_0001>

<bundles_post_ra>
// kernel: tpu_custom_call.1
= control target key start
LH: loop header
LB: loop body
LE: loop exit
PB: predicated region body
PF: predicated region fallthrough
CT: control target
= control target key end

     0   :  { %8 = vsyncpa [#allocation3], 0  ;;  %s2541_s0 = inlined_call_operand.hbm [shape: s32[8,8], index: 0, kind: input, shape index: {}]   ;;  %s2542_s1 = inlined_call_operand.vmem [shape: f32[1,9], index: 1, kind: input, shape index: {}]   ;;  %s2543_s2 = inlined_call_operand.hbm [shape: f32[232,128], index: 2, kind: input, shape index: {}]   ;;  %s2544_s3 = inlined_call_operand.hbm [shape: f32[8,128], index: 3, kind: output, shape index: {}]  }
   0x1   :  { %9 = vsyncpa [#allocation5], 0 }
   0x2   :  { %10 = vsyncpa [#allocation8], 0 }
   0x3   :  { %11 = vsyncpa [#allocation4], 0  ;;  %s28_s14 = sshll.u32 %s2542_s1, 4  ;;  %s2228_s15 = smov [#allocation2]   ;;  %s29_s14 = int_to_ptr.vmem [resolvable:$true] %s28_s14 }
   0x4   :  { %s18_s16 = sshll.u32 %s2228_s15, 4  ;;  %s19_s16 = int_to_ptr.vmem [resolvable:$true] %s18_s16 }
   0x5   :  { %s2156_s17 = scalar_lea.vmem %s19_s16, 128  ;;  %p2161_p1 = scmp.lt.s32.totalorder %s19_s16, %s19_s16 }
   0x6   :  { %p2157_p0 = scmp.ne.s32.totalorder %s19_s16, %s2156_s17  ;;  %p2162_p2 = scmp.lt.s32.totalorder %s2156_s17, %s2156_s17 }
   0x8   :  { %p2163_p3 = por %p2162_p2, %p2161_p1 }
   0xa   :  { %p2164_p4 = pnand %p2163_p3, %p2157_p0 }
   0xc   :  { %2167 = shalt.err (!%p2164_p4)
}
   0xd   :  { %21 = dma.hbm_to_vmem [thread:$0]  %s2541_s0, 128, %s19_s16, [#allocation3]  }
   0xe   :  { %s2168_s20 = scalar_lea.vmem %s29_s14, 16  ;;  %p2173_p6 = scmp.lt.s32.totalorder %s29_s14, %s29_s14 }
   0xf   :  { %p2169_p5 = scmp.ne.s32.totalorder %s29_s14, %s2168_s20  ;;  %p2174_p7 = scmp.lt.s32.totalorder %s2168_s20, %s2168_s20 }
  0x11   :  { %p2175_p8 = por %p2174_p7, %p2173_p6 }
  0x13   :  { %p2176_p9 = pnand %p2175_p8, %p2169_p5 }
  0x15   :  { %2179 = shalt.err (!%p2176_p9)
}
  0x16   :  { %s2229_s1 = smov [#allocation6]   ;;  %s2230_s21 = smov [#allocation7]  }
  0x17   :  { %31 = dma.vmem_to_smem %s29_s14, 16, %s2229_s1, [#allocation5]  }
  0x18   :  { %s37_s22 = sshll.u32 %s2230_s21, 4  ;;  %s38_s22 = int_to_ptr.vmem [resolvable:$true] %s37_s22 }
  0x19   :  { %s2188_s23 = scalar_lea.vmem %s38_s22, 3712  ;;  %p2193_p11 = scmp.lt.s32.totalorder %s38_s22, %s38_s22 }
  0x1a   :  { %p2189_p10 = scmp.ne.s32.totalorder %s38_s22, %s2188_s23  ;;  %p2194_p12 = scmp.lt.s32.totalorder %s2188_s23, %s2188_s23 }
  0x1c   :  { %p2195_p13 = por %p2194_p12, %p2193_p11 }
  0x1e   :  { %p2196_p0 = pnand %p2195_p13, %p2189_p10 }
  0x20   :  { %2199 = shalt.err (!%p2196_p0)
}
  0x21   :  { %s2231_s0 = smov 128   ;;  %s2232_s24 = smov 8  }
  0x22   :  { %43 = dma.hbm_to_vmem [thread:$0]  %s2543_s2, 3712, %s38_s22, [#allocation8], %s2231_s0, %s2231_s0, %s2232_s24  }
  0x23   :  { %2220 = dma.done.wait [#allocation3], 128  }
  0x24   :  { %2221 = vsyncadd [#allocation3], 4294967168 }
  0x25   :  { %2222 = dma.done.wait [#allocation5], 16  }
  0x26   :  { %2223 = vsyncadd [#allocation5], 4294967280 }
  0x27   :  { %2224 = dma.done.wait [#allocation8], 3712  }
  0x28   :  { %2225 = vsyncadd [#allocation8], 4294963584 }
  0x29   :  { %53 = sfence }
  0x2a   :  { %v2275_v0 = vld [vmem:[#allocation2] sm:$0xff]  ;;  %v2277_v1 = vld [vmem:[#allocation7 + $0x30] sm:$0xff]  ;;  %v2233_v2 = vmov 0   ;;  %v2234_v3 = vmov 0.0   ;;  %v2280_v4 = vld [vmem:[#allocation7 + $0x28] sm:$0xff]  ;;  %vm2235_vm0 = vmmov 0   ;;  %v84_v10 = vlaneseq }
  0x2b   :  { %2076 = vset.pattern.permute.xlu0 %v2233_v2  ;;  %1852 = vmatprep.subr.mxu0 %v2234_v3  ;;  %v2285_v5 = vld [vmem:[#allocation7 + $0x20] sm:$0xff]  ;;  %v2290_v6 = vld [vmem:[#allocation7 + $0x10] sm:$0xff]  ;;  %v2294_v7 = vld [vmem:[#allocation7 + $0x18] sm:$0xff]  ;;  %vm166_vm1 = vcmask 195584   ;;  %s2236_s2 = smov 32   ;;  %v2237_v26 = vmov 1  }
  0x2c   :  { %87 = vperm.xlu0 %2076, %v2275_v0   ;;  %1853 = vmatpush3.msra.mxu0 %v2277_v1  ;;  %v2298_v8 = vld [vmem:[#allocation7 + $0x8] sm:$0xff]  ;;  %v2308_v9 = vld [vmem:[#allocation7] sm:$0xff]  ;;  %v2321_v11 = vand.u32 127, %v84_v10  ;;  %s2238_s27 = smov 64   ;;  %vm92_vm3 = vcmask 261120   ;;  %v2239_v48 = vmov 2  }
  0x2d   :  { %1854 = vmatprep.subr.mxu0 %v2234_v3  ;;  %1860 = vmatprep.mubr.msk.f32.mxu0 %vm2235_vm0, %v2234_v3  ;;  %s264_s28 = sld [smem:[#allocation6]]  ;;  %s2245_s10 = smov [#allocation9]  }
  0x2e   :  { %1855 = vmatpush3.msra.mxu0 %v2280_v4  ;;  %1903 = vmatprep.subr.mxu1 %v2234_v3  ;;  %s1723_s29 = sld [smem:[#allocation6 + $0x1]]  ;;  %s1705_s11 = sshll.u32 %s2245_s10, 4  ;;  %s1706_s11 = int_to_ptr.vmem [resolvable:$true] %s1705_s11 }
  0x2f   :  { %1856 = vmatprep.subr.mxu0 %v2234_v3  ;;  %1904 = vmatpush3.msra.mxu1 %v2290_v6  ;;  %s1728_s30 = sld [smem:[#allocation6 + $0x2]]  ;;  %s2200_s12 = scalar_lea.vmem %s1706_s11, 128 }
  0x30   :  { %1857 = vmatpush3.msra.mxu0 %v2285_v5  ;;  %1905 = vmatprep.subr.mxu1 %v2234_v3  ;;  %s1733_s4 = sld [smem:[#allocation6 + $0x3]]  ;;  %p2201_p1 = scmp.ne.s32.totalorder %s1706_s11, %s2200_s12 }
  0x31   :  { %1858 = vmatprep.subr.mxu0 %v2234_v3  ;;  %1906 = vmatpush3.msra.mxu1 %v2298_v8  ;;  %s1738_s5 = sld [smem:[#allocation6 + $0x4]]  ;;  %p2205_p2 = scmp.lt.s32.totalorder %s1706_s11, %s1706_s11 }
  0x32   :  { %1859 = vmatpush3.msra.mxu0 %v2294_v7  ;;  %1907 = vmatprep.subr.mxu1 %v2234_v3  ;;  %s1743_s6 = sld [smem:[#allocation6 + $0x5]]  ;;  %p2206_p3 = scmp.lt.s32.totalorder %s2200_s12, %s2200_s12 }
  0x33   :  { %1861 = vmatmul.mubr.f32.vlgmr.msra.gmra.mxu0 %v2234_v3  ;;  %1863 = vmatprep.subr.mxu0 %v2234_v3  ;;  %v265_v55 = vstv %s264_s28  ;;  %s1748_s7 = sld [smem:[#allocation6 + $0x6]] }
  0x34   :  { %1864 = vmatpush3.msra.mxu0 %v2290_v6  ;;  %1869 = vmatprep.mubr.msk.f32.mxu0 %vm2235_vm0, %v2234_v3  ;;  %v447_v56 = vstv %s1723_s29  ;;  %s1753_s8 = sld [smem:[#allocation6 + $0x7]]  ;;  %p2207_p4 = por %p2206_p3, %p2205_p2 }
  0x35   :  { %1865 = vmatprep.subr.mxu0 %v2234_v3  ;;  %1908 = vmatpush3.msra.mxu1 %v2308_v9  ;;  %s1754_s9 = sld [smem:[#allocation6 + $0x8]] }
  0x36   :  { %1866 = vmatpush3.msra.mxu0 %v2298_v8  ;;  %1909 = vmatprep.mubr.msk.f32.mxu1 %vm2235_vm0, %v2234_v3  ;;  %p2208_p5 = pnand %p2207_p4, %p2201_p1 }
  0x37   :  { %1867 = vmatprep.subr.mxu0 %v2234_v3  ;;  %1912 = vmatprep.subr.mxu1 %v2234_v3 }
  0x38   :  { %1868 = vmatpush3.msra.mxu0 %v2308_v9  ;;  %2077 = vset.pattern.permute.xlu0 %v2237_v26 }
  0x39   :  { %1872 = vmatprep.subr.mxu0 %v2234_v3 }
  0xa7   :  { %v88_v12 = vpop.permute.xlu0 %87 }
  0xa8   :  { %vm89_vm2 = vcmp.eq.s32.totalorder %v88_v12, %v2321_v11 }
  0xa9   :  { %v1716_v13 = vsel %vm89_vm2, 1.0, %v2234_v3 }
  0xaa   :  { %1870 = vmatmul.mubr.msk.f32.vlgmr.msra.gmra.mxu0 %vm166_vm1, %v1716_v13 }
  0xab   :  { %1873 = vmatpush3.msra.mxu0 %v2277_v1  ;;  %1880 = vmatprep.mubr.msk.f32.mxu0 %vm2235_vm0, %v2234_v3 }
  0xac   :  { %1874 = vmatprep.subr.mxu0 %v2234_v3 }
  0xad   :  { %1875 = vmatpush3.msra.mxu0 %v2280_v4 }
  0xae   :  { %1876 = vmatprep.subr.mxu0 %v2234_v3 }
  0xaf   :  { %1877 = vmatpush3.msra.mxu0 %v2285_v5 }
  0xb0   :  { %1878 = vmatprep.subr.mxu0 %v2234_v3 }
  0xb1   :  { %1879 = vmatpush3.msra.mxu0 %v2294_v7 }
  0xb2   :  { %1883 = vmatprep.subr.mxu0 %v2234_v3 }
  0xf3   :  { %v162_v14 = vpop.f32.mrf.mxu0 }
  0xf5   :  { %v1862_v15 = vpop.f32.mrf.mxu0 }
 0x16a   :  { %v236_v16 = vpop.f32.mrf.mxu0 }
 0x16b   :  { %v237_v17 = vadd.f32 %v236_v16, %v162_v14 }
 0x16c   :  { %v1871_v18 = vpop.f32.mrf.mxu0 }
 0x16d   :  { %2084 = vtanh.f32 %v237_v17  ;;  %v1718_v20 = vmul.f32 -1.442695, %v237_v17 }
 0x16f   :  { %2086 = vpow2.f32 %v1718_v20 }
 0x17a   :  { %v2085_v19 = vpop.eup %2084 }
 0x17b   :  { %249 = vrot.lane.b32.xlu0 %v2085_v19, %s2236_s2 }
 0x17c   :  { %v2087_v21 = vpop.eup %2086 }
 0x17d   :  { %v243_v22 = vadd.f32 1.0, %v2087_v21  ;;  %v2240_v21 = vmov 3  }
 0x17f   :  { %2088 = vrcp.f32 %v243_v22  ;;  %269 = vperm.xlu0 %2077, %v2275_v0  }
 0x183   :  { %2078 = vset.pattern.permute.xlu0 %v2239_v48 }
 0x18c   :  { %v2089_v23 = vpop.eup %2088 }
 0x18d   :  { %v247_v27 = vmul.f32 0.0, %v2089_v23 }
 0x1ed   :  { %v250_v24 = vpop.permute.xlu0 %249 }
 0x1ee   :  { %v252_v25 = vmul.f32 %v2089_v23, %v250_v24 }
 0x1f0   :  { %254 = vrot.lane.b32.xlu1 %v252_v25, %s2236_s2 }
 0x1fa   :  { %v270_v33 = vpop.permute.xlu0 %269 }
 0x1fb   :  { %vm271_vm4 = vcmp.eq.s32.totalorder %v270_v33, %v2321_v11 }
 0x1fc   :  { %v1719_v35 = vsel %vm271_vm4, 1.0, %v2234_v3 }
 0x262   :  { %v255_v28 = vpop.permute.xlu1 %254 }
 0x263   :  { %v257_v29 = vadd.f32 %v255_v28, %v247_v27  ;;  %v629_v28 = vstv %s1728_s30 }
 0x265   :  { %2090 = vtanh.f32 %v257_v29 }
 0x272   :  { %v2091_v30 = vpop.eup %2090 }
 0x273   :  { %260 = vrot.lane.b32.xlu1 %v2091_v30, %s2236_s2 }
 0x2e5   :  { %v261_v31 = vpop.permute.xlu1 %260 }
 0x2e6   :  { %v2340_v32 = vmul.f32 %v2089_v23, %v261_v31 }
 0x2e8   :  { %275 = vrot.lane.b32.xlu1 %v2340_v32, %s2238_s27  ;;  %v266_v59 = vmul.f32 %v265_v55, %v2340_v32 }
 0x35a   :  { %v276_v34 = vpop.permute.xlu1 %275 }
 0x35b   :  { %1881 = vmatmul.mubr.msk.f32.vlgmr.msra.gmra.mxu0 %vm92_vm3, %v276_v34 }
 0x35c   :  { %1884 = vmatpush3.msra.mxu0 %v2290_v6  ;;  %1889 = vmatprep.mubr.msk.f32.mxu0 %vm2235_vm0, %v2234_v3 }
 0x35d   :  { %1885 = vmatprep.subr.mxu0 %v2234_v3 }
 0x35e   :  { %1886 = vmatpush3.msra.mxu0 %v2298_v8 }
 0x35f   :  { %1887 = vmatprep.subr.mxu0 %v2234_v3 }
 0x360   :  { %1888 = vmatpush3.msra.mxu0 %v2308_v9 }
 0x361   :  { %1890 = vmatmul.mubr.msk.f32.vlgmr.msra.gmra.mxu0 %vm166_vm1, %v1719_v35  ;;  %1892 = vmatprep.subr.mxu0 %v2234_v3 }
 0x362   :  { %1893 = vmatpush3.msra.mxu0 %v2277_v1  ;;  %1900 = vmatprep.mubr.msk.f32.mxu0 %vm2235_vm0, %v2234_v3 }
 0x363   :  { %1894 = vmatprep.subr.mxu0 %v2234_v3 }
 0x364   :  { %1895 = vmatpush3.msra.mxu0 %v2280_v4 }
 0x365   :  { %1896 = vmatprep.subr.mxu0 %v2234_v3 }
 0x366   :  { %1897 = vmatpush3.msra.mxu0 %v2285_v5 }
 0x367   :  { %1898 = vmatprep.subr.mxu0 %v2234_v3 }
 0x368   :  { %1899 = vmatpush3.msra.mxu0 %v2294_v7 }
 0x369   :  { %1923 = vmatprep.subr.mxu0 %v2234_v3 }
 0x41b   :  { %v345_v36 = vpop.f32.mrf.mxu0 }
 0x41d   :  { %v1882_v37 = vpop.f32.mrf.mxu0 }
 0x421   :  { %v418_v38 = vpop.f32.mrf.mxu0 }
 0x422   :  { %v419_v39 = vadd.f32 %v418_v38, %v345_v36 }
 0x423   :  { %v1891_v40 = vpop.f32.mrf.mxu0 }
 0x424   :  { %2092 = vtanh.f32 %v419_v39  ;;  %v1722_v42 = vmul.f32 -1.442695, %v419_v39 }
 0x426   :  { %2094 = vpow2.f32 %v1722_v42 }
 0x431   :  { %v2093_v41 = vpop.eup %2092 }
 0x432   :  { %431 = vrot.lane.b32.xlu1 %v2093_v41, %s2236_s2 }
 0x433   :  { %v2095_v43 = vpop.eup %2094 }
 0x434   :  { %v425_v44 = vadd.f32 1.0, %v2095_v43 }
 0x436   :  { %2096 = vrcp.f32 %v425_v44 }
 0x443   :  { %v2097_v45 = vpop.eup %2096 }
 0x444   :  { %v429_v49 = vmul.f32 %v2097_v45, %v257_v29 }
 0x4a4   :  { %v432_v46 = vpop.permute.xlu1 %431 }
 0x4a5   :  { %v434_v47 = vmul.f32 %v2097_v45, %v432_v46  ;;  %v2241_v46 = vmov 4  }
 0x4a7   :  { %436 = vrot.lane.b32.xlu0 %v434_v47, %s2236_s2 }
 0x4ab   :  { %451 = vperm.xlu0 %2078, %v2275_v0  }
 0x4af   :  { %2079 = vset.pattern.permute.xlu0 %v2240_v21 }
 0x519   :  { %v437_v50 = vpop.permute.xlu0 %436 }
 0x51a   :  { %v439_v51 = vadd.f32 %v437_v50, %v429_v49 }
 0x51c   :  { %2098 = vtanh.f32 %v439_v51 }
 0x526   :  { %v452_v52 = vpop.permute.xlu0 %451 }
 0x527   :  { %vm453_vm5 = vcmp.eq.s32.totalorder %v452_v52, %v2321_v11 }
 0x528   :  { %v1724_v54 = vsel %vm453_vm5, 1.0, %v2234_v3 }
 0x529   :  { %v2099_v53 = vpop.eup %2098  ;;  %1910 = vmatmul.mubr.msk.f32.vlgmr.msra.gmra.mxu1 %vm166_vm1, %v1724_v54 }
 0x52a   :  { %442 = vrot.lane.b32.xlu1 %v2099_v53, %s2236_s2  ;;  %1913 = vmatpush3.msra.mxu1 %v2277_v1  ;;  %v811_v53 = vstv %s1733_s4 }
 0x52b   :  { %1920 = vmatprep.mubr.msk.f32.mxu1 %vm2235_vm0, %v2234_v3  ;;  %1914 = vmatprep.subr.mxu1 %v2234_v3 }
 0x52c   :  { %1915 = vmatpush3.msra.mxu1 %v2280_v4 }
 0x52d   :  { %1916 = vmatprep.subr.mxu1 %v2234_v3 }
 0x52e   :  { %1917 = vmatpush3.msra.mxu1 %v2285_v5 }
 0x52f   :  { %1918 = vmatprep.subr.mxu1 %v2234_v3 }
 0x530   :  { %1919 = vmatpush3.msra.mxu1 %v2294_v7 }
 0x531   :  { %1943 = vmatprep.subr.mxu1 %v2234_v3 }
 0x59c   :  { %v443_v57 = vpop.permute.xlu1 %442 }
 0x59d   :  { %v445_v58 = vmul.f32 %v2097_v45, %v443_v57 }
 0x59f   :  { %v448_v60 = vmul.f32 %v447_v56, %v445_v58  ;;  %457 = vrot.lane.b32.xlu1 %v445_v58, %s2238_s27 }
 0x5a1   :  { %v449_v61 = vadd.f32 %v448_v60, %v266_v59 }
 0x5e9   :  { %v600_v62 = vpop.f32.mrf.mxu1 }
 0x5eb   :  { %v1911_v63 = vpop.f32.mrf.mxu1 }
 0x611   :  { %v458_v2 = vpop.permute.xlu1 %457 }
 0x612   :  { %1901 = vmatmul.mubr.msk.f32.vlgmr.msra.gmra.mxu0 %vm92_vm3, %v458_v2 }
 0x613   :  { %1924 = vmatpush3.msra.mxu0 %v2290_v6  ;;  %1929 = vmatprep.mubr.msk.f32.mxu0 %vm2235_vm0, %v2234_v3 }
 0x614   :  { %1925 = vmatprep.subr.mxu0 %v2234_v3 }
 0x615   :  { %1926 = vmatpush3.msra.mxu0 %v2298_v8 }
 0x616   :  { %1927 = vmatprep.subr.mxu0 %v2234_v3 }
 0x617   :  { %1928 = vmatpush3.msra.mxu0 %v2308_v9 }
 0x618   :  { %1932 = vmatprep.subr.mxu0 %v2234_v3 }
 0x6d2   :  { %v527_v10 = vpop.f32.mrf.mxu0 }
 0x6d3   :  { %v601_v12 = vadd.f32 %v600_v62, %v527_v10 }
 0x6d4   :  { %v1902_v13 = vpop.f32.mrf.mxu0 }
 0x6d5   :  { %2100 = vtanh.f32 %v601_v12  ;;  %v1727_v15 = vmul.f32 -1.442695, %v601_v12 }
 0x6d7   :  { %2102 = vpow2.f32 %v1727_v15 }
 0x6e2   :  { %v2101_v14 = vpop.eup %2100 }
 0x6e3   :  { %613 = vrot.lane.b32.xlu1 %v2101_v14, %s2236_s2 }
 0x6e4   :  { %v2103_v16 = vpop.eup %2102 }
 0x6e5   :  { %v607_v17 = vadd.f32 1.0, %v2103_v16 }
 0x6e7   :  { %2104 = vrcp.f32 %v607_v17  ;;  %v2242_v17 = vmov 5  }
 0x6f4   :  { %v2105_v18 = vpop.eup %2104 }
 0x6f5   :  { %v611_v22 = vmul.f32 %v2105_v18, %v439_v51 }
 0x755   :  { %v614_v19 = vpop.permute.xlu1 %613 }
 0x756   :  { %v616_v20 = vmul.f32 %v2105_v18, %v614_v19 }
 0x758   :  { %618 = vrot.lane.b32.xlu0 %v616_v20, %s2236_s2 }
 0x75c   :  { %633 = vperm.xlu0 %2079, %v2275_v0  }
 0x760   :  { %2080 = vset.pattern.permute.xlu0 %v2241_v46 }
 0x7ca   :  { %v619_v23 = vpop.permute.xlu0 %618 }
 0x7cb   :  { %v621_v24 = vadd.f32 %v619_v23, %v611_v22 }
 0x7cd   :  { %2106 = vtanh.f32 %v621_v24 }
 0x7d7   :  { %v634_v25 = vpop.permute.xlu0 %633 }
 0x7d8   :  { %vm635_vm6 = vcmp.eq.s32.totalorder %v634_v25, %v2321_v11 }
 0x7d9   :  { %v1729_v27 = vsel %vm635_vm6, 1.0, %v2234_v3 }
 0x7da   :  { %v2107_v26 = vpop.eup %2106  ;;  %1930 = vmatmul.mubr.msk.f32.vlgmr.msra.gmra.mxu0 %vm166_vm1, %v1729_v27 }
 0x7db   :  { %624 = vrot.lane.b32.xlu1 %v2107_v26, %s2236_s2  ;;  %1933 = vmatpush3.msra.mxu0 %v2277_v1 }
 0x7dc   :  { %1940 = vmatprep.mubr.msk.f32.mxu0 %vm2235_vm0, %v2234_v3  ;;  %1934 = vmatprep.subr.mxu0 %v2234_v3 }
 0x7dd   :  { %1935 = vmatpush3.msra.mxu0 %v2280_v4 }
 0x7de   :  { %1936 = vmatprep.subr.mxu0 %v2234_v3 }
 0x7df   :  { %1937 = vmatpush3.msra.mxu0 %v2285_v5 }
 0x7e0   :  { %1938 = vmatprep.subr.mxu0 %v2234_v3 }
 0x7e1   :  { %1939 = vmatpush3.msra.mxu0 %v2294_v7 }
 0x7e2   :  { %1963 = vmatprep.subr.mxu0 %v2234_v3 }
 0x84d   :  { %v625_v29 = vpop.permute.xlu1 %624 }
 0x84e   :  { %v627_v30 = vmul.f32 %v2105_v18, %v625_v29 }
 0x850   :  { %v630_v31 = vmul.f32 %v629_v28, %v627_v30  ;;  %639 = vrot.lane.b32.xlu1 %v627_v30, %s2238_s27 }
 0x852   :  { %v631_v32 = vadd.f32 %v630_v31, %v449_v61 }
 0x89a   :  { %v782_v33 = vpop.f32.mrf.mxu0 }
 0x89c   :  { %v1931_v34 = vpop.f32.mrf.mxu0 }
 0x8c2   :  { %v640_v35 = vpop.permute.xlu1 %639 }
 0x8c3   :  { %1921 = vmatmul.mubr.msk.f32.vlgmr.msra.gmra.mxu1 %vm92_vm3, %v640_v35 }
 0x8c4   :  { %1944 = vmatpush3.msra.mxu1 %v2290_v6  ;;  %1949 = vmatprep.mubr.msk.f32.mxu1 %vm2235_vm0, %v2234_v3 }
 0x8c5   :  { %1945 = vmatprep.subr.mxu1 %v2234_v3 }
 0x8c6   :  { %1946 = vmatpush3.msra.mxu1 %v2298_v8 }
 0x8c7   :  { %1947 = vmatprep.subr.mxu1 %v2234_v3 }
 0x8c8   :  { %1948 = vmatpush3.msra.mxu1 %v2308_v9 }
 0x8c9   :  { %1952 = vmatprep.subr.mxu1 %v2234_v3 }
 0x983   :  { %v709_v36 = vpop.f32.mrf.mxu1 }
 0x984   :  { %v783_v37 = vadd.f32 %v782_v33, %v709_v36 }
 0x985   :  { %v1922_v38 = vpop.f32.mrf.mxu1 }
 0x986   :  { %2108 = vtanh.f32 %v783_v37  ;;  %v1732_v40 = vmul.f32 -1.442695, %v783_v37 }
 0x988   :  { %2110 = vpow2.f32 %v1732_v40 }
 0x993   :  { %v2109_v39 = vpop.eup %2108 }
 0x994   :  { %795 = vrot.lane.b32.xlu1 %v2109_v39, %s2236_s2 }
 0x995   :  { %v2111_v41 = vpop.eup %2110 }
 0x996   :  { %v789_v42 = vadd.f32 1.0, %v2111_v41 }
 0x998   :  { %2112 = vrcp.f32 %v789_v42  ;;  %v2243_v42 = vmov 6  }
 0x9a5   :  { %v2113_v43 = vpop.eup %2112 }
 0x9a6   :  { %v793_v47 = vmul.f32 %v2113_v43, %v621_v24  ;;  %v993_v24 = vstv %s1738_s5 }
 0xa06   :  { %v796_v44 = vpop.permute.xlu1 %795 }
 0xa07   :  { %v798_v45 = vmul.f32 %v2113_v43, %v796_v44 }
 0xa09   :  { %800 = vrot.lane.b32.xlu0 %v798_v45, %s2236_s2 }
 0xa0d   :  { %815 = vperm.xlu0 %2080, %v2275_v0  }
 0xa11   :  { %2081 = vset.pattern.permute.xlu0 %v2242_v17 }
 0xa7b   :  { %v801_v48 = vpop.permute.xlu0 %800 }
 0xa7c   :  { %v803_v49 = vadd.f32 %v801_v48, %v793_v47 }
 0xa7e   :  { %2114 = vtanh.f32 %v803_v49 }
 0xa88   :  { %v816_v50 = vpop.permute.xlu0 %815 }
 0xa89   :  { %vm817_vm7 = vcmp.eq.s32.totalorder %v816_v50, %v2321_v11 }
 0xa8a   :  { %v1734_v52 = vsel %vm817_vm7, 1.0, %v2234_v3 }
 0xa8b   :  { %v2115_v51 = vpop.eup %2114  ;;  %1950 = vmatmul.mubr.msk.f32.vlgmr.msra.gmra.mxu1 %vm166_vm1, %v1734_v52 }
 0xa8c   :  { %806 = vrot.lane.b32.xlu1 %v2115_v51, %s2236_s2  ;;  %1953 = vmatpush3.msra.mxu1 %v2277_v1 }
 0xa8d   :  { %1960 = vmatprep.mubr.msk.f32.mxu1 %vm2235_vm0, %v2234_v3  ;;  %1954 = vmatprep.subr.mxu1 %v2234_v3 }
 0xa8e   :  { %1955 = vmatpush3.msra.mxu1 %v2280_v4 }
 0xa8f   :  { %1956 = vmatprep.subr.mxu1 %v2234_v3 }
 0xa90   :  { %1957 = vmatpush3.msra.mxu1 %v2285_v5 }
 0xa91   :  { %1958 = vmatprep.subr.mxu1 %v2234_v3 }
 0xa92   :  { %1959 = vmatpush3.msra.mxu1 %v2294_v7 }
 0xa93   :  { %1983 = vmatprep.subr.mxu1 %v2234_v3 }
 0xafe   :  { %v807_v54 = vpop.permute.xlu1 %806 }
 0xaff   :  { %v809_v55 = vmul.f32 %v2113_v43, %v807_v54 }
 0xb01   :  { %v812_v56 = vmul.f32 %v811_v53, %v809_v55  ;;  %821 = vrot.lane.b32.xlu1 %v809_v55, %s2238_s27 }
 0xb03   :  { %v813_v57 = vadd.f32 %v812_v56, %v631_v32 }
 0xb4b   :  { %v964_v58 = vpop.f32.mrf.mxu1 }
 0xb4d   :  { %v1951_v59 = vpop.f32.mrf.mxu1 }
 0xb73   :  { %v822_v60 = vpop.permute.xlu1 %821 }
 0xb74   :  { %1941 = vmatmul.mubr.msk.f32.vlgmr.msra.gmra.mxu0 %vm92_vm3, %v822_v60 }
 0xb75   :  { %1964 = vmatpush3.msra.mxu0 %v2290_v6  ;;  %1969 = vmatprep.mubr.msk.f32.mxu0 %vm2235_vm0, %v2234_v3 }
 0xb76   :  { %1965 = vmatprep.subr.mxu0 %v2234_v3 }
 0xb77   :  { %1966 = vmatpush3.msra.mxu0 %v2298_v8 }
 0xb78   :  { %1967 = vmatprep.subr.mxu0 %v2234_v3 }
 0xb79   :  { %1968 = vmatpush3.msra.mxu0 %v2308_v9 }
 0xb7a   :  { %1972 = vmatprep.subr.mxu0 %v2234_v3 }
 0xc34   :  { %v891_v61 = vpop.f32.mrf.mxu0 }
 0xc35   :  { %v965_v62 = vadd.f32 %v964_v58, %v891_v61 }
 0xc36   :  { %v1942_v63 = vpop.f32.mrf.mxu0 }
 0xc37   :  { %2116 = vtanh.f32 %v965_v62  ;;  %v1737_v10 = vmul.f32 -1.442695, %v965_v62 }
 0xc39   :  { %2118 = vpow2.f32 %v1737_v10 }
 0xc44   :  { %v2117_v2 = vpop.eup %2116 }
 0xc45   :  { %977 = vrot.lane.b32.xlu1 %v2117_v2, %s2236_s2 }
 0xc46   :  { %v2119_v12 = vpop.eup %2118 }
 0xc47   :  { %v971_v13 = vadd.f32 1.0, %v2119_v12 }
 0xc49   :  { %2120 = vrcp.f32 %v971_v13  ;;  %v1357_v13 = vstv %s1748_s7 }
 0xc56   :  { %v2121_v14 = vpop.eup %2120 }
 0xc57   :  { %v975_v18 = vmul.f32 %v2121_v14, %v803_v49  ;;  %v1175_v49 = vstv %s1743_s6 }
 0xcb7   :  { %v978_v15 = vpop.permute.xlu1 %977 }
 0xcb8   :  { %v980_v16 = vmul.f32 %v2121_v14, %v978_v15 }
 0xcba   :  { %982 = vrot.lane.b32.xlu0 %v980_v16, %s2236_s2 }
 0xcbe   :  { %997 = vperm.xlu0 %2081, %v2275_v0  }
 0xcc2   :  { %2082 = vset.pattern.permute.xlu0 %v2243_v42  ;;  %v78_v42 = vld [vmem:[#allocation7 + $0xc0] sm:$0xff] }
 0xd2c   :  { %v983_v19 = vpop.permute.xlu0 %982 }
 0xd2d   :  { %v985_v20 = vadd.f32 %v983_v19, %v975_v18 }
 0xd2f   :  { %2122 = vtanh.f32 %v985_v20 }
 0xd39   :  { %v998_v21 = vpop.permute.xlu0 %997 }
 0xd3a   :  { %vm999_vm8 = vcmp.eq.s32.totalorder %v998_v21, %v2321_v11 }
 0xd3b   :  { %v1739_v23 = vsel %vm999_vm8, 1.0, %v2234_v3 }
 0xd3c   :  { %v2123_v22 = vpop.eup %2122  ;;  %1970 = vmatmul.mubr.msk.f32.vlgmr.msra.gmra.mxu0 %vm166_vm1, %v1739_v23 }
 0xd3d   :  { %988 = vrot.lane.b32.xlu1 %v2123_v22, %s2236_s2  ;;  %1973 = vmatpush3.msra.mxu0 %v2277_v1 }
 0xd3e   :  { %1980 = vmatprep.mubr.msk.f32.mxu0 %vm2235_vm0, %v2234_v3  ;;  %1974 = vmatprep.subr.mxu0 %v2234_v3 }
 0xd3f   :  { %1975 = vmatpush3.msra.mxu0 %v2280_v4 }
 0xd40   :  { %1976 = vmatprep.subr.mxu0 %v2234_v3 }
 0xd41   :  { %1977 = vmatpush3.msra.mxu0 %v2285_v5 }
 0xd42   :  { %1978 = vmatprep.subr.mxu0 %v2234_v3 }
 0xd43   :  { %1979 = vmatpush3.msra.mxu0 %v2294_v7 }
 0xd44   :  { %2003 = vmatprep.subr.mxu0 %v2234_v3 }
 0xdaf   :  { %v989_v25 = vpop.permute.xlu1 %988 }
 0xdb0   :  { %v991_v26 = vmul.f32 %v2121_v14, %v989_v25 }
 0xdb2   :  { %v994_v27 = vmul.f32 %v993_v24, %v991_v26  ;;  %1003 = vrot.lane.b32.xlu1 %v991_v26, %s2238_s27 }
 0xdb4   :  { %v995_v28 = vadd.f32 %v994_v27, %v813_v57 }
 0xdfc   :  { %v1146_v29 = vpop.f32.mrf.mxu0 }
 0xdfe   :  { %v1971_v30 = vpop.f32.mrf.mxu0 }
 0xe24   :  { %v1004_v31 = vpop.permute.xlu1 %1003 }
 0xe25   :  { %1961 = vmatmul.mubr.msk.f32.vlgmr.msra.gmra.mxu1 %vm92_vm3, %v1004_v31 }
 0xe26   :  { %1984 = vmatpush3.msra.mxu1 %v2290_v6  ;;  %1989 = vmatprep.mubr.msk.f32.mxu1 %vm2235_vm0, %v2234_v3 }
 0xe27   :  { %1985 = vmatprep.subr.mxu1 %v2234_v3 }
 0xe28   :  { %1986 = vmatpush3.msra.mxu1 %v2298_v8 }
 0xe29   :  { %1987 = vmatprep.subr.mxu1 %v2234_v3 }
 0xe2a   :  { %1988 = vmatpush3.msra.mxu1 %v2308_v9 }
 0xe2b   :  { %1992 = vmatprep.subr.mxu1 %v2234_v3 }
 0xee5   :  { %v1073_v32 = vpop.f32.mrf.mxu1 }
 0xee6   :  { %v1147_v33 = vadd.f32 %v1146_v29, %v1073_v32  ;;  %v64_v32 = vld [vmem:[#allocation7 + $0x50] sm:$0xff] }
 0xee7   :  { %v1962_v34 = vpop.f32.mrf.mxu1 }
 0xee8   :  { %2124 = vtanh.f32 %v1147_v33  ;;  %v1742_v36 = vmul.f32 -1.442695, %v1147_v33  ;;  %v63_v33 = vld [vmem:[#allocation7 + $0x48] sm:$0xff]  ;;  %v62_v34 = vld [vmem:[#allocation7 + $0x40] sm:$0xff] }
 0xeea   :  { %2126 = vpow2.f32 %v1742_v36  ;;  %v61_v36 = vld [vmem:[#allocation7 + $0x38] sm:$0xff] }
 0xef5   :  { %v2125_v35 = vpop.eup %2124 }
 0xef6   :  { %1159 = vrot.lane.b32.xlu1 %v2125_v35, %s2236_s2 }
 0xef7   :  { %v2127_v37 = vpop.eup %2126 }
 0xef8   :  { %v1153_v38 = vadd.f32 1.0, %v2127_v37  ;;  %v81_v37 = vld [vmem:[#allocation7 + $0xd8] sm:$0xff] }
 0xefa   :  { %2128 = vrcp.f32 %v1153_v38  ;;  %v80_v38 = vld [vmem:[#allocation7 + $0xd0] sm:$0xff] }
 0xf07   :  { %v2129_v39 = vpop.eup %2128 }
 0xf08   :  { %v1157_v43 = vmul.f32 %v2129_v39, %v985_v20 }
 0xf68   :  { %v1160_v40 = vpop.permute.xlu1 %1159 }
 0xf69   :  { %v1162_v41 = vmul.f32 %v2129_v39, %v1160_v40  ;;  %v1539_v40 = vstv %s1753_s8 }
 0xf6b   :  { %1164 = vrot.lane.b32.xlu0 %v1162_v41, %s2236_s2 }
 0xf6f   :  { %1179 = vperm.xlu0 %2082, %v2275_v0  }
 0xfdd   :  { %v1165_v44 = vpop.permute.xlu0 %1164 }
 0xfde   :  { %v1167_v45 = vadd.f32 %v1165_v44, %v1157_v43  ;;  %v77_v44 = vld [vmem:[#allocation7 + $0xb8] sm:$0xff] }
 0xfe0   :  { %2130 = vtanh.f32 %v1167_v45 }
 0xfea   :  { %v1180_v46 = vpop.permute.xlu0 %1179 }
 0xfeb   :  { %vm1181_vm9 = vcmp.eq.s32.totalorder %v1180_v46, %v2321_v11  ;;  %v1543_v46 = vstv %s1754_s9 }
 0xfec   :  { %v1744_v48 = vsel %vm1181_vm9, 1.0, %v2234_v3 }
 0xfed   :  { %v2131_v47 = vpop.eup %2130  ;;  %1990 = vmatmul.mubr.msk.f32.vlgmr.msra.gmra.mxu1 %vm166_vm1, %v1744_v48 }
 0xfee   :  { %1170 = vrot.lane.b32.xlu1 %v2131_v47, %s2236_s2  ;;  %1993 = vmatpush3.msra.mxu1 %v2277_v1  ;;  %v76_v47 = vld [vmem:[#allocation7 + $0xb0] sm:$0xff] }
 0xfef   :  { %2000 = vmatprep.mubr.msk.f32.mxu1 %vm2235_vm0, %v2234_v3  ;;  %1994 = vmatprep.subr.mxu1 %v2234_v3 }
 0xff0   :  { %1995 = vmatpush3.msra.mxu1 %v2280_v4 }
 0xff1   :  { %1996 = vmatprep.subr.mxu1 %v2234_v3 }
 0xff2   :  { %1997 = vmatpush3.msra.mxu1 %v2285_v5 }
 0xff3   :  { %1998 = vmatprep.subr.mxu1 %v2234_v3 }
 0xff4   :  { %1999 = vmatpush3.msra.mxu1 %v2294_v7 }
 0xff5   :  { %2023 = vmatprep.subr.mxu1 %v2234_v3 }
0x1060   :  { %v1171_v1 = vpop.permute.xlu1 %1170 }
0x1061   :  { %v1173_v50 = vmul.f32 %v2129_v39, %v1171_v1  ;;  %v79_v39 = vld [vmem:[#allocation7 + $0xc8] sm:$0xff] }
0x1063   :  { %v1176_v51 = vmul.f32 %v1175_v49, %v1173_v50  ;;  %1185 = vrot.lane.b32.xlu1 %v1173_v50, %s2238_s27  ;;  %v75_v49 = vld [vmem:[#allocation7 + $0xa8] sm:$0xff]  ;;  %v74_v50 = vld [vmem:[#allocation7 + $0xa0] sm:$0xff] }
0x1065   :  { %v1177_v52 = vadd.f32 %v1176_v51, %v995_v28  ;;  %v73_v51 = vld [vmem:[#allocation7 + $0x98] sm:$0xff] }
0x10ad   :  { %v1328_v53 = vpop.f32.mrf.mxu1 }
0x10af   :  { %v1991_v4 = vpop.f32.mrf.mxu1 }
0x10b0   :  { %v70_v4 = vld [vmem:[#allocation7 + $0x80] sm:$0xff] }
0x10d5   :  { %v1186_v54 = vpop.permute.xlu1 %1185 }
0x10d6   :  { %1981 = vmatmul.mubr.msk.f32.vlgmr.msra.gmra.mxu0 %vm92_vm3, %v1186_v54  ;;  %v69_v54 = vld [vmem:[#allocation7 + $0x78] sm:$0xff] }
0x10d7   :  { %2004 = vmatpush3.msra.mxu0 %v2290_v6  ;;  %2009 = vmatprep.mubr.msk.f32.mxu0 %vm2235_vm0, %v2234_v3 }
0x10d8   :  { %2005 = vmatprep.subr.mxu0 %v2234_v3 }
0x10d9   :  { %2006 = vmatpush3.msra.mxu0 %v2298_v8 }
0x10da   :  { %2007 = vmatprep.subr.mxu0 %v2234_v3 }
0x10db   :  { %2008 = vmatpush3.msra.mxu0 %v2308_v9  ;;  %v2244_v9 = vmov 7  }
0x10dc   :  { %2012 = vmatprep.subr.mxu0 %v2234_v3  ;;  %2083 = vset.pattern.permute.xlu0 %v2244_v9 }
0x1196   :  { %v1255_v5 = vpop.f32.mrf.mxu0 }
0x1197   :  { %v1329_v7 = vadd.f32 %v1328_v53, %v1255_v5  ;;  %v71_v53 = vld [vmem:[#allocation7 + $0x88] sm:$0xff]  ;;  %v68_v5 = vld [vmem:[#allocation7 + $0x70] sm:$0xff] }
0x1198   :  { %v1982_v55 = vpop.f32.mrf.mxu0 }
0x1199   :  { %2132 = vtanh.f32 %v1329_v7  ;;  %v1747_v6 = vmul.f32 -1.442695, %v1329_v7  ;;  %v67_v55 = vld [vmem:[#allocation7 + $0x68] sm:$0xff] }
0x119b   :  { %2134 = vpow2.f32 %v1747_v6  ;;  %v1755_v6 = vld [vmem:[#allocation7 + $0x58] ss:$0 sm:$0xff] }
0x11a6   :  { %v2133_v56 = vpop.eup %2132 }
0x11a7   :  { %1341 = vrot.lane.b32.xlu1 %v2133_v56, %s2236_s2  ;;  %v66_v56 = vld [vmem:[#allocation7 + $0x60] sm:$0xff] }
0x11a8   :  { %v2135_v57 = vpop.eup %2134 }
0x11a9   :  { %v1335_v58 = vadd.f32 1.0, %v2135_v57 }
0x11ab   :  { %2136 = vrcp.f32 %v1335_v58 }
0x11b8   :  { %v2137_v59 = vpop.eup %2136 }
0x11b9   :  { %v1339_v61 = vmul.f32 %v2137_v59, %v1167_v45 }
0x1219   :  { %v1342_v8 = vpop.permute.xlu1 %1341 }
0x121a   :  { %v1344_v60 = vmul.f32 %v2137_v59, %v1342_v8  ;;  %v1757_v8 = vld [vmem:[#allocation7 + $0xe0] ss:$0 sm:$0xff] }
0x121c   :  { %1346 = vrot.lane.b32.xlu0 %v1344_v60, %s2236_s2 }
0x1220   :  { %1361 = vperm.xlu0 %2083, %v2275_v0  }
0x128e   :  { %v1347_v62 = vpop.permute.xlu0 %1346 }
0x128f   :  { %v1349_v63 = vadd.f32 %v1347_v62, %v1339_v61 }
0x1291   :  { %2138 = vtanh.f32 %v1349_v63 }
0x129b   :  { %v1362_v2 = vpop.permute.xlu0 %1361 }
0x129c   :  { %vm1363_vm10 = vcmp.eq.s32.totalorder %v1362_v2, %v2321_v11 }
0x129d   :  { %v1749_v12 = vsel %vm1363_vm10, 1.0, %v2234_v3 }
0x129e   :  { %v2139_v10 = vpop.eup %2138  ;;  %2010 = vmatmul.mubr.msk.f32.vlgmr.msra.gmra.mxu0 %vm166_vm1, %v1749_v12 }
0x129f   :  { %1352 = vrot.lane.b32.xlu1 %v2139_v10, %s2236_s2  ;;  %2020 = vmatprep.mubr.msk.f32.mxu0 %vm2235_vm0, %v2234_v3 }
0x12a0   :  { %2013 = vmatpush3.msra.mxu0 %v64_v32 }
0x12a1   :  { %2014 = vmatprep.subr.mxu0 %v2234_v3 }
0x12a2   :  { %2015 = vmatpush3.msra.mxu0 %v63_v33 }
0x12a3   :  { %2016 = vmatprep.subr.mxu0 %v2234_v3 }
0x12a4   :  { %2017 = vmatpush3.msra.mxu0 %v62_v34 }
0x12a5   :  { %2018 = vmatprep.subr.mxu0 %v2234_v3 }
0x12a6   :  { %2019 = vmatpush3.msra.mxu0 %v61_v36 }
0x1311   :  { %v1353_v0 = vpop.permute.xlu1 %1352 }
0x1312   :  { %v1355_v14 = vmul.f32 %v2137_v59, %v1353_v0 }
0x1314   :  { %v1358_v15 = vmul.f32 %v1357_v13, %v1355_v14  ;;  %1367 = vrot.lane.b32.xlu1 %v1355_v14, %s2238_s27 }
0x1316   :  { %v1359_v16 = vadd.f32 %v1358_v15, %v1177_v52  ;;  %v72_v52 = vld [vmem:[#allocation7 + $0x90] sm:$0xff] }
0x135e   :  { %v1510_v17 = vpop.f32.mrf.mxu0 }
0x1360   :  { %v2011_v11 = vpop.f32.mrf.mxu0 }
0x1386   :  { %v1368_v18 = vpop.permute.xlu1 %1367 }
0x1387   :  { %2001 = vmatmul.mubr.msk.f32.vlgmr.msra.gmra.mxu1 %vm92_vm3, %v1368_v18 }
0x1388   :  { %2055 = vmatprep.mubr.msk.f32.mxu1 %vm2235_vm0, %v2234_v3  ;;  %2024 = vmatpush3.msra.mxu1 %v81_v37 }
0x1389   :  { %2025 = vmatprep.subr.mxu1 %v2234_v3 }
0x138a   :  { %2026 = vmatpush3.msra.mxu1 %v80_v38 }
0x138b   :  { %2027 = vmatprep.subr.mxu1 %v2234_v3 }
0x138c   :  { %2028 = vmatpush3.msra.mxu1 %v79_v39 }
0x138d   :  { %2029 = vmatprep.subr.mxu1 %v2234_v3 }
0x138e   :  { %2030 = vmatpush3.msra.mxu1 %v78_v42 }
0x138f   :  { %2031 = vmatprep.subr.mxu1 %v2234_v3 }
0x1390   :  { %2032 = vmatpush3.msra.mxu1 %v77_v44 }
0x1391   :  { %2033 = vmatprep.subr.mxu1 %v2234_v3 }
0x1392   :  { %2034 = vmatpush3.msra.mxu1 %v76_v47 }
0x1393   :  { %2035 = vmatprep.subr.mxu1 %v2234_v3 }
0x1394   :  { %2036 = vmatpush3.msra.mxu1 %v75_v49 }
0x1395   :  { %2037 = vmatprep.subr.mxu1 %v2234_v3 }
0x1396   :  { %2038 = vmatpush3.msra.mxu1 %v74_v50 }
0x1397   :  { %2039 = vmatprep.subr.mxu1 %v2234_v3 }
0x1398   :  { %2040 = vmatpush3.msra.mxu1 %v73_v51 }
0x1399   :  { %2041 = vmatprep.subr.mxu1 %v2234_v3 }
0x139a   :  { %2042 = vmatpush3.msra.mxu1 %v72_v52 }
0x139b   :  { %2043 = vmatprep.subr.mxu1 %v2234_v3 }
0x139c   :  { %2044 = vmatpush3.msra.mxu1 %v71_v53 }
0x139d   :  { %2045 = vmatprep.subr.mxu1 %v2234_v3 }
0x139e   :  { %2046 = vmatpush3.msra.mxu1 %v70_v4 }
0x139f   :  { %2047 = vmatprep.subr.mxu1 %v2234_v3 }
0x13a0   :  { %2048 = vmatpush3.msra.mxu1 %v69_v54 }
0x13a1   :  { %2049 = vmatprep.subr.mxu1 %v2234_v3 }
0x13a2   :  { %2050 = vmatpush3.msra.mxu1 %v68_v5 }
0x13a3   :  { %2051 = vmatprep.subr.mxu1 %v2234_v3 }
0x13a4   :  { %2052 = vmatpush3.msra.mxu1 %v67_v55 }
0x13a5   :  { %2053 = vmatprep.subr.mxu1 %v2234_v3 }
0x13a6   :  { %2054 = vmatpush3.msra.mxu1 %v66_v56 }
0x1447   :  { %v1437_v19 = vpop.f32.mrf.mxu1 }
0x1448   :  { %v1511_v20 = vadd.f32 %v1510_v17, %v1437_v19 }
0x1449   :  { %v2002_v21 = vpop.f32.mrf.mxu1 }
0x144a   :  { %2140 = vtanh.f32 %v1511_v20  ;;  %v1752_v23 = vmul.f32 -1.442695, %v1511_v20 }
0x144c   :  { %2142 = vpow2.f32 %v1752_v23 }
0x1457   :  { %v2141_v22 = vpop.eup %2140 }
0x1458   :  { %1523 = vrot.lane.b32.xlu1 %v2141_v22, %s2236_s2 }
0x1459   :  { %v2143_v24 = vpop.eup %2142 }
0x145a   :  { %v1517_v25 = vadd.f32 1.0, %v2143_v24 }
0x145c   :  { %2144 = vrcp.f32 %v1517_v25 }
0x1469   :  { %v2145_v26 = vpop.eup %2144 }
0x146a   :  { %v1521_v29 = vmul.f32 %v2145_v26, %v1349_v63 }
0x14ca   :  { %v1524_v27 = vpop.permute.xlu1 %1523 }
0x14cb   :  { %v1526_v28 = vmul.f32 %v2145_v26, %v1524_v27 }
0x14cd   :  { %1528 = vrot.lane.b32.xlu0 %v1526_v28, %s2236_s2 }
0x153f   :  { %v1529_v30 = vpop.permute.xlu0 %1528 }
0x1540   :  { %v1531_v31 = vadd.f32 %v1529_v30, %v1521_v29 }
0x1542   :  { %2146 = vtanh.f32 %v1531_v31 }
0x154f   :  { %v2147_v35 = vpop.eup %2146 }
0x1550   :  { %1534 = vrot.lane.b32.xlu1 %v2147_v35, %s2236_s2 }
0x15c2   :  { %v1535_v41 = vpop.permute.xlu1 %1534 }
0x15c3   :  { %v1537_v43 = vmul.f32 %v2145_v26, %v1535_v41 }
0x15c5   :  { %v1540_v45 = vmul.f32 %v1539_v40, %v1537_v43 }
0x15c7   :  { %v1541_v48 = vadd.f32 %v1540_v45, %v1359_v16 }
0x15c9   :  { %v1544_v1 = vadd.f32 %v1543_v46, %v1541_v48 }
0x15cb   :  { %1550 = vrot.lane.b32.xlu0 %v1544_v1, %s2238_s27 }
0x163d   :  { %v1551_v7 = vpop.permute.xlu0 %1550 }
0x163e   :  { %2021 = vmatmul.mubr.msk.f32.vlgmr.msra.gmra.mxu0 %vm92_vm3, %v1551_v7 }
0x16fe   :  { %v1620_v57 = vpop.f32.mrf.mxu0 }
0x16ff   :  { %v1621_v58 = vadd.f32 %v1755_v6, %v1620_v57 }
0x1700   :  { %v2022_v59 = vpop.f32.mrf.mxu0 }
0x1701   :  { %2056 = vmatmul.mubr.f32.vlgmr.msra.gmra.mxu1 %v1621_v58 }
0x17c1   :  { %v1694_v60 = vpop.f32.mrf.mxu1 }
0x17c2   :  { %v1695_v9 = vadd.f32 %v1757_v8, %v1694_v60 }
0x17c3   :  { %v2057_v61 = vpop.f32.mrf.mxu1 }
0x17c4   :  { %1698 = vst [vmem:[#allocation9] sm:$0xff] %v1695_v9 }
0x17c5   :  { %2211 = shalt.err (!%p2208_p5)
}
0x17c6   :  { %1708 = dma.vmem_to_hbm [thread:$0]  %s1706_s11, 128, %s2544_s3, [#allocation4]  }
0x17c7   :  { %2226 = dma.done.wait [#allocation4], 128  }
0x17c8   :  { %2227 = vsyncadd [#allocation4], 4294967168 }
0x17c9   :  { %1712 = vsyncpa [#allocation3], 1 }
0x17ca   :  { %1713 = vsyncpa [#allocation8], 1 }
0x17cb   :  { %1714 = vsyncpa [#allocation4], 1 }
0x17cc   :  { %1715 = vsyncpa [#allocation5], 1 }

</bundles_post_ra>
